<compile_context>
chip_gen: v5e
topology: v5e:2x2
jax: 0.10.0
libtpu: 0.0.40
codegen_flags: <defaults>
</compile_context>

<pallas_src>
import math
import jax
import jax.numpy as jnp
from jax.experimental import pallas as pl
from jax.experimental.pallas import tpu as pltpu


# ----------------------------------------------------------------------------
# Fused Pallas kernel: adapt + all RGCN layers + pooled head, one graph / step
# ----------------------------------------------------------------------------

def _fused_rgcn_kernel(word_raw_ref, topic_ref,
                       a_ww_ref, a_wt_ref, a_tt_ref, a_wd_ref, a_td_ref,
                       msk_wd_ref, msk_td_ref, y_ref,
                       adapt_w_ref, adapt_b_ref,
                       w_wwt_ref, b_wwt_ref, w_tt_ref, b_tt_ref,
                       w_wdtd_ref, b_wd_ref, b_td_ref,
                       wo_d_ref, wo_w_ref, wo_t_ref, bo_ref,
                       loss_ref, pred_ref):
    f32 = jnp.float32
    bf16 = jnp.bfloat16
    H = adapt_w_ref.shape[1]
    L = w_wwt_ref.shape[0]

    # adapt_ws: word projection n_inp -> H (fused; no separate pallas_call).
    xw = (jnp.dot(word_raw_ref[0], adapt_w_ref[...],
                  preferred_element_type=f32)
          + adapt_b_ref[...]).astype(bf16)                       # (Nw, H)
    xt = topic_ref[0]                                            # (Nt, H) bf16

    a_ww = a_ww_ref[0]
    a_wt = a_wt_ref[0]
    a_tt = a_tt_ref[0]
    a_wd = a_wd_ref[0]
    a_td = a_td_ref[0]
    msk_wd = msk_wd_ref[0]                                       # (Nd, 1) exact 0/1
    msk_td = msk_td_ref[0]

    hw = ht = hd = None
    for l in range(L):                                           # static unroll
        # Shared word projection for ww|wt: one lane-dense 2H-wide matmul.
        wh_w = (jnp.dot(xw, w_wwt_ref[l], preferred_element_type=f32)
                + b_wwt_ref[l]).astype(bf16)                     # (Nw, 2H)
        wh_t = (jnp.dot(xt, w_tt_ref[l], preferred_element_type=f32)
                + b_tt_ref[l]).astype(bf16)                      # (Nt, H)

        # Mean aggregation: deg_inv pre-folded into the transposed adjacency.
        m_ww = jnp.dot(a_ww, wh_w[:, 0:H], preferred_element_type=f32)
        m_wt = jnp.dot(a_wt, wh_w[:, H:2 * H], preferred_element_type=f32)
        m_tt = jnp.dot(a_tt, wh_t, preferred_element_type=f32)

        hw = jnp.maximum(m_ww, 0.0)                              # (Nw, H) f32
        ht = jnp.maximum(m_wt + m_tt, 0.0)                       # (Nt, H) f32

        if l == L - 1:
            # Doc outputs of earlier layers are overwritten (doc is never a
            # source etype), so only the last layer runs the doc path.
            # Few dst nodes -> aggregate first, then ONE K=2H projection with
            # the pre-stacked [W_wd; W_td]; bias restored via exact 0/1 masks.
            agg_wd = jnp.dot(a_wd, xw, preferred_element_type=f32).astype(bf16)
            agg_td = jnp.dot(a_td, xt, preferred_element_type=f32).astype(bf16)
            agg = jnp.concatenate([agg_wd, agg_td], axis=-1)     # (Nd, 2H)
            m_d = (jnp.dot(agg, w_wdtd_ref[l], preferred_element_type=f32)
                   + msk_wd * b_wd_ref[l] + msk_td * b_td_ref[l])
            hd = jnp.maximum(m_d, 0.0)                           # (Nd, H) f32

        xw = hw.astype(bf16)
        xt = ht.astype(bf16)
        # TODO(synk): nn.Dropout(0.5) is training-only; identity in eval mode.

    # Fused head: max-pool each node type (f32), out_layer as VPU multiply +
    # lane reduction (avoids N=1 MXU pushes), BCE-with-logits term, sigmoid.
    gd = jnp.max(hd, axis=0, keepdims=True)                      # (1, H)
    gw = jnp.max(hw, axis=0, keepdims=True)
    gt = jnp.max(ht, axis=0, keepdims=True)
    z = (jnp.sum(gd * wo_d_ref[...] + gw * wo_w_ref[...] + gt * wo_t_ref[...],
                 axis=-1, keepdims=True)
         + bo_ref[...])                                          # (1, 1)
    y = y_ref[0]                                                 # (1, 1)
    per = jnp.maximum(z, 0.0) - z * y + jnp.log1p(jnp.exp(-jnp.abs(z)))
    loss_ref[0] = per                                            # per-graph term
    pred_ref[0] = 1.0 / (1.0 + jnp.exp(-z))


def rgcn_all_forward(params, word_ids, topic_ids, adjs, y_data):
    B, Nw = word_ids.shape
    word_raw = params["word_embeds"][word_ids]      # (B, Nw, n_inp) bf16 (glue gather)
    topic_emb = params["topic_embeds"][topic_ids]   # (B, Nt, H)    bf16 (glue gather)
    n_inp = word_raw.shape[-1]
    Nt = topic_emb.shape[1]
    H = params["adapt_w"].shape[1]
    Nd = adjs["wd_T"].shape[1]
    L = params["w_wwt"].shape[0]

    y3 = y_data.reshape(B, 1, 1).astype(jnp.float32)

    per_graph = lambda i: (i, 0, 0)
    full2 = lambda i: (0, 0)
    full3 = lambda i: (0, 0, 0)

    in_specs = [
        pl.BlockSpec((1, Nw, n_inp), per_graph),     # word_raw
        pl.BlockSpec((1, Nt, H), per_graph),         # topic_emb
        pl.BlockSpec((1, Nw, Nw), per_graph),        # A_ww^T (deg_inv folded)
        pl.BlockSpec((1, Nt, Nw), per_graph),        # A_wt^T
        pl.BlockSpec((1, Nt, Nt), per_graph),        # A_tt^T
        pl.BlockSpec((1, Nd, Nw), per_graph),        # A_wd^T
        pl.BlockSpec((1, Nd, Nt), per_graph),        # A_td^T
        pl.BlockSpec((1, Nd, 1), per_graph),         # mask_wd (exact f32 0/1)
        pl.BlockSpec((1, Nd, 1), per_graph),         # mask_td
        pl.BlockSpec((1, 1, 1), per_graph),          # y
        pl.BlockSpec((n_inp, H), full2),             # adapt_w
        pl.BlockSpec((1, H), full2),                 # adapt_b
        pl.BlockSpec((L, H, 2 * H), full3),          # W_ww|W_wt stacked
        pl.BlockSpec((L, 1, 2 * H), full3),          # b_ww|b_wt
        pl.BlockSpec((L, H, H), full3),              # W_tt
        pl.BlockSpec((L, 1, H), full3),              # b_tt
        pl.BlockSpec((L, 2 * H, H), full3),          # [W_wd; W_td] K-stacked
        pl.BlockSpec((L, 1, H), full3),              # b_wd
        pl.BlockSpec((L, 1, H), full3),              # b_td
        pl.BlockSpec((1, H), full2),                 # out_w (doc slice)
        pl.BlockSpec((1, H), full2),                 # out_w (word slice)
        pl.BlockSpec((1, H), full2),                 # out_w (topic slice)
        pl.BlockSpec((1, 1), full2),                 # out_b
    ]
    out_specs = (
        pl.BlockSpec((1, 1, 1), per_graph),          # per-graph BCE term
        pl.BlockSpec((1, 1, 1), per_graph),          # per-graph sigmoid pred
    )

    # TODO(synk): for production graph sizes the whole-graph adjacency blocks
    # need destination-row tiling (v7x 64 MiB VMEM); not needed at toy shapes.
    loss_terms, pred = pl.pallas_call(
        _fused_rgcn_kernel,
        out_shape=(
            jax.ShapeDtypeStruct((B, 1, 1), jnp.float32),
            jax.ShapeDtypeStruct((B, 1, 1), jnp.float32),
        ),
        grid=(B,),
        in_specs=in_specs,
        out_specs=out_specs,
        compiler_params=pltpu.CompilerParams(
            dimension_semantics=("parallel",),
            vmem_limit_bytes=32 * 1024 * 1024),
    )(word_raw, topic_emb,
      adjs["ww_T"], adjs["wt_T"], adjs["tt_T"], adjs["wd_T"], adjs["td_T"],
      adjs["msk_wd"], adjs["msk_td"], y3,
      params["adapt_w"], params["adapt_b"],
      params["w_wwt"], params["b_wwt"], params["w_tt"], params["b_tt"],
      params["w_wdtd"], params["b_wd"], params["b_td"],
      params["out_w_doc"], params["out_w_word"], params["out_w_topic"],
      params["out_b"])

    loss = jnp.mean(loss_terms)          # batch-mean of per-graph BCE (glue)
    return loss, pred.reshape(B, 1)


# ----------------------------------------------------------------------------
# Parameter initialization (deterministic, mimicking init_weights)
# ----------------------------------------------------------------------------

def xavier_uniform(key, in_dim, out_dim, gain):
    bound = gain * math.sqrt(6.0 / (in_dim + out_dim))
    return jax.random.uniform(
        key, (in_dim, out_dim), jnp.float32, minval=-bound, maxval=bound)


def bias_uniform(key, out_dim):
    stdv = 1.0 / math.sqrt(out_dim)
    return jax.random.uniform(
        key, (1, out_dim), jnp.float32, minval=-stdv, maxval=stdv)


def init_params(key, n_inp, n_hid, n_layers, num_topic, vocab_size):
    gain = math.sqrt(2.0)                         # calculate_gain('relu')
    keys = iter(jax.random.split(key, 8 + n_layers * 10))
    word_embeds = xavier_uniform(next(keys), vocab_size, n_inp, gain)
    topic_embeds = xavier_uniform(next(keys), num_topic, n_hid, gain)
    # doc_gen_embeds is unused in forward(); omitted.
    adapt_w = xavier_uniform(next(keys), n_inp, n_hid, gain)
    adapt_b = bias_uniform(next(keys), n_hid)
    out_w = xavier_uniform(next(keys), 3 * n_hid, 1, gain)
    out_b = bias_uniform(next(keys), 1)

    w_wwt, b_wwt, w_tt, b_tt, w_wdtd, b_wd, b_td = [], [], [], [], [], [], []
    for _ in range(n_layers):
        w, b = {}, {}
        for etype in ("ww", "wt", "tt", "wd", "td"):
            w[etype] = xavier_uniform(next(keys), n_hid, n_hid, gain)
            b[etype] = bias_uniform(next(keys), n_hid)
        # ww|wt share their source (word) features: concat along Dout (N-fuse).
        w_wwt.append(jnp.concatenate([w["ww"], w["wt"]], axis=1))
        b_wwt.append(jnp.concatenate([b["ww"], b["wt"]], axis=1))
        w_tt.append(w["tt"])
        b_tt.append(b["tt"])
        # wd|td projections fused along K: [W_wd; W_td] -> (2H, H).
        w_wdtd.append(jnp.concatenate([w["wd"], w["td"]], axis=0))
        b_wd.append(b["wd"])
        b_td.append(b["td"])

    stack = lambda xs, dt: jnp.stack(xs, axis=0).astype(dt)
    return dict(
        word_embeds=word_embeds.astype(jnp.bfloat16),
        topic_embeds=topic_embeds.astype(jnp.bfloat16),
        adapt_w=adapt_w.astype(jnp.bfloat16),
        adapt_b=adapt_b,
        w_wwt=stack(w_wwt, jnp.bfloat16), b_wwt=stack(b_wwt, jnp.float32),
        w_tt=stack(w_tt, jnp.bfloat16), b_tt=stack(b_tt, jnp.float32),
        w_wdtd=stack(w_wdtd, jnp.bfloat16),
        b_wd=stack(b_wd, jnp.float32), b_td=stack(b_td, jnp.float32),
        # concat order of the head: doc, word, topic (row vectors for VPU dot)
        out_w_doc=out_w[0:n_hid].reshape(1, n_hid),
        out_w_word=out_w[n_hid:2 * n_hid].reshape(1, n_hid),
        out_w_topic=out_w[2 * n_hid:3 * n_hid].reshape(1, n_hid),
        out_b=out_b,
    )


# ----------------------------------------------------------------------------
# Synthetic graphs (adjacency pre-transposed, deg_inv pre-folded, exact masks)
# ----------------------------------------------------------------------------

def make_adj(key, B, n_dst, n_src, p=0.4):
    a = jax.random.bernoulli(key, p, (B, n_dst, n_src)).astype(jnp.float32)
    deg = jnp.sum(a, axis=-1, keepdims=True)
    dinv = jnp.where(deg > 0, 1.0 / jnp.maximum(deg, 1.0), 0.0)
    folded = (a * dinv).astype(jnp.bfloat16)        # mean folded once, off hot path
    mask = (deg > 0).astype(jnp.float32)            # exact 0/1 zero-degree bias mask
    return folded, mask


if __name__ == "__main__":
    # Small shapes consistent with the module; n_hid = 128 for lane-dense tiles,
    # Nt/Nd sized to full packed bf16 sublane groups (doc padded 2 -> 16 with
    # all-zero adjacency rows + zero masks).
    B = 2
    Nw, Nt = 32, 16
    Nd_real, Nd = 2, 16
    n_inp, n_hid, n_layers = 64, 128, 2
    num_topic, vocab_size = 10, 100

    key = jax.random.PRNGKey(0)
    k_par, k_wid, k_tid, k_y, *k_adj = jax.random.split(key, 9)

    params = init_params(k_par, n_inp, n_hid, n_layers, num_topic, vocab_size)

    word_ids = jax.random.randint(k_wid, (B, Nw), 0, vocab_size)
    topic_ids = jax.random.randint(k_tid, (B, Nt), 0, num_topic)
    y_data = jax.random.bernoulli(k_y, 0.5, (B,)).astype(jnp.float32)

    adjs = {}
    adjs["ww_T"], _ = make_adj(k_adj[0], B, Nw, Nw)
    adjs["wt_T"], _ = make_adj(k_adj[1], B, Nt, Nw)
    adjs["tt_T"], _ = make_adj(k_adj[2], B, Nt, Nt)
    wd, m_wd = make_adj(k_adj[3], B, Nd_real, Nw)
    td, m_td = make_adj(k_adj[4], B, Nd_real, Nt)
    pad = ((0, 0), (0, Nd - Nd_real), (0, 0))
    adjs["wd_T"] = jnp.pad(wd, pad)
    adjs["td_T"] = jnp.pad(td, pad)
    adjs["msk_wd"] = jnp.pad(m_wd, pad)
    adjs["msk_td"] = jnp.pad(m_td, pad)

    loss, y_pred = rgcn_all_forward(params, word_ids, topic_ids, adjs, y_data)
    jax.block_until_ready((loss, y_pred))
    assert y_pred.shape == (B, 1)
    assert bool(jnp.isfinite(loss))
    print("KERNEL_OK")
</pallas_src>

<mosaic_0001>
module attributes {stable_mosaic.version = 11 : i64} {
  func.func @_fused_rgcn_kernel(%arg0: i32, %arg1: memref<1x32x64xbf16, #tpu.memory_space<vmem>>, %arg2: memref<1x16x128xbf16, #tpu.memory_space<vmem>>, %arg3: memref<1x32x32xbf16, #tpu.memory_space<vmem>>, %arg4: memref<1x16x32xbf16, #tpu.memory_space<vmem>>, %arg5: memref<1x16x16xbf16, #tpu.memory_space<vmem>>, %arg6: memref<1x16x32xbf16, #tpu.memory_space<vmem>>, %arg7: memref<1x16x16xbf16, #tpu.memory_space<vmem>>, %arg8: memref<1x16x1xf32, #tpu.memory_space<vmem>>, %arg9: memref<1x16x1xf32, #tpu.memory_space<vmem>>, %arg10: memref<1x1x1xf32, #tpu.memory_space<vmem>>, %arg11: memref<64x128xbf16, #tpu.memory_space<vmem>>, %arg12: memref<1x128xf32, #tpu.memory_space<vmem>>, %arg13: memref<2x128x256xbf16, #tpu.memory_space<vmem>>, %arg14: memref<2x1x256xf32, #tpu.memory_space<vmem>>, %arg15: memref<2x128x128xbf16, #tpu.memory_space<vmem>>, %arg16: memref<2x1x128xf32, #tpu.memory_space<vmem>>, %arg17: memref<2x256x128xbf16, #tpu.memory_space<vmem>>, %arg18: memref<2x1x128xf32, #tpu.memory_space<vmem>>, %arg19: memref<2x1x128xf32, #tpu.memory_space<vmem>>, %arg20: memref<1x128xf32, #tpu.memory_space<vmem>>, %arg21: memref<1x128xf32, #tpu.memory_space<vmem>>, %arg22: memref<1x128xf32, #tpu.memory_space<vmem>>, %arg23: memref<1x1xf32, #tpu.memory_space<vmem>>, %arg24: memref<1x1x1xf32, #tpu.memory_space<vmem>>, %arg25: memref<1x1x1xf32, #tpu.memory_space<vmem>>) attributes {dimension_semantics = [#tpu.dimension_semantics<parallel>], iteration_bounds = array<i64: 2>, scalar_prefetch = 0 : i64, scratch_operands = 0 : i64, tpu.core_type = #tpu.core_type<tc>, window_params = [{transform_indices = @transform_0, window_bounds = array<i64: 1, 32, 64>}, {transform_indices = @transform_1, window_bounds = array<i64: 1, 16, 128>}, {transform_indices = @transform_2, window_bounds = array<i64: 1, 32, 32>}, {transform_indices = @transform_3, window_bounds = array<i64: 1, 16, 32>}, {transform_indices = @transform_4, window_bounds = array<i64: 1, 16, 16>}, {transform_indices = @transform_5, window_bounds = array<i64: 1, 16, 32>}, {transform_indices = @transform_6, window_bounds = array<i64: 1, 16, 16>}, {transform_indices = @transform_7, window_bounds = array<i64: 1, 16, 1>}, {transform_indices = @transform_8, window_bounds = array<i64: 1, 16, 1>}, {transform_indices = @transform_9, window_bounds = array<i64: 1, 1, 1>}, {pipeline_mode = #tpu.pipeline_mode<synchronous>, transform_indices = @transform_10, window_bounds = array<i64: 64, 128>}, {pipeline_mode = #tpu.pipeline_mode<synchronous>, transform_indices = @transform_11, window_bounds = array<i64: 1, 128>}, {pipeline_mode = #tpu.pipeline_mode<synchronous>, transform_indices = @transform_12, window_bounds = array<i64: 2, 128, 256>}, {pipeline_mode = #tpu.pipeline_mode<synchronous>, transform_indices = @transform_13, window_bounds = array<i64: 2, 1, 256>}, {pipeline_mode = #tpu.pipeline_mode<synchronous>, transform_indices = @transform_14, window_bounds = array<i64: 2, 128, 128>}, {pipeline_mode = #tpu.pipeline_mode<synchronous>, transform_indices = @transform_15, window_bounds = array<i64: 2, 1, 128>}, {pipeline_mode = #tpu.pipeline_mode<synchronous>, transform_indices = @transform_16, window_bounds = array<i64: 2, 256, 128>}, {pipeline_mode = #tpu.pipeline_mode<synchronous>, transform_indices = @transform_17, window_bounds = array<i64: 2, 1, 128>}, {pipeline_mode = #tpu.pipeline_mode<synchronous>, transform_indices = @transform_18, window_bounds = array<i64: 2, 1, 128>}, {pipeline_mode = #tpu.pipeline_mode<synchronous>, transform_indices = @transform_19, window_bounds = array<i64: 1, 128>}, {pipeline_mode = #tpu.pipeline_mode<synchronous>, transform_indices = @transform_20, window_bounds = array<i64: 1, 128>}, {pipeline_mode = #tpu.pipeline_mode<synchronous>, transform_indices = @transform_21, window_bounds = array<i64: 1, 128>}, {pipeline_mode = #tpu.pipeline_mode<synchronous>, transform_indices = @transform_22, window_bounds = array<i64: 1, 1>}, {transform_indices = @transform_23, window_bounds = array<i64: 1, 1, 1>}, {transform_indices = @transform_24, window_bounds = array<i64: 1, 1, 1>}]} {
    %c0 = arith.constant 0 : index
    %c0_0 = arith.constant 0 : index
    %c0_1 = arith.constant 0 : index
    %0 = vector.load %arg1[%c0, %c0_0, %c0_1] : memref<1x32x64xbf16, #tpu.memory_space<vmem>>, vector<1x32x64xbf16>
    %1 = vector.shape_cast %0 : vector<1x32x64xbf16> to vector<32x64xbf16>
    %c0_2 = arith.constant 0 : index
    %c0_3 = arith.constant 0 : index
    %2 = vector.load %arg11[%c0_2, %c0_3] : memref<64x128xbf16, #tpu.memory_space<vmem>>, vector<64x128xbf16>
    %cst = arith.constant dense<0.000000e+00> : vector<32x128xf32>
    %3 = tpu.matmul %1, %2, %cst {dimension_numbers = #tpu.dot_dimension_numbers<[1], [0], [0], [1], [0, 0, 1, 1], [], []>} : vector<32x64xbf16>, vector<64x128xbf16>, vector<32x128xf32> -> vector<32x128xf32>
    %c0_4 = arith.constant 0 : index
    %c0_5 = arith.constant 0 : index
    %4 = vector.load %arg12[%c0_4, %c0_5] : memref<1x128xf32, #tpu.memory_space<vmem>>, vector<1x128xf32>
    %5 = vector.broadcast %4 : vector<1x128xf32> to vector<32x128xf32>
    %6 = arith.addf %3, %5 : vector<32x128xf32>
    %7 = arith.truncf %6 : vector<32x128xf32> to vector<32x128xbf16>
    %c0_6 = arith.constant 0 : index
    %c0_7 = arith.constant 0 : index
    %c0_8 = arith.constant 0 : index
    %8 = vector.load %arg2[%c0_6, %c0_7, %c0_8] : memref<1x16x128xbf16, #tpu.memory_space<vmem>>, vector<1x16x128xbf16>
    %9 = vector.shape_cast %8 : vector<1x16x128xbf16> to vector<16x128xbf16>
    %c0_9 = arith.constant 0 : index
    %c0_10 = arith.constant 0 : index
    %c0_11 = arith.constant 0 : index
    %10 = vector.load %arg3[%c0_9, %c0_10, %c0_11] : memref<1x32x32xbf16, #tpu.memory_space<vmem>>, vector<1x32x32xbf16>
    %11 = vector.shape_cast %10 : vector<1x32x32xbf16> to vector<32x32xbf16>
    %c0_12 = arith.constant 0 : index
    %c0_13 = arith.constant 0 : index
    %c0_14 = arith.constant 0 : index
    %12 = vector.load %arg4[%c0_12, %c0_13, %c0_14] : memref<1x16x32xbf16, #tpu.memory_space<vmem>>, vector<1x16x32xbf16>
    %13 = vector.shape_cast %12 : vector<1x16x32xbf16> to vector<16x32xbf16>
    %c0_15 = arith.constant 0 : index
    %c0_16 = arith.constant 0 : index
    %c0_17 = arith.constant 0 : index
    %14 = vector.load %arg5[%c0_15, %c0_16, %c0_17] : memref<1x16x16xbf16, #tpu.memory_space<vmem>>, vector<1x16x16xbf16>
    %15 = vector.shape_cast %14 : vector<1x16x16xbf16> to vector<16x16xbf16>
    %c0_18 = arith.constant 0 : index
    %c0_19 = arith.constant 0 : index
    %c0_20 = arith.constant 0 : index
    %16 = vector.load %arg6[%c0_18, %c0_19, %c0_20] : memref<1x16x32xbf16, #tpu.memory_space<vmem>>, vector<1x16x32xbf16>
    %17 = vector.shape_cast %16 : vector<1x16x32xbf16> to vector<16x32xbf16>
    %c0_21 = arith.constant 0 : index
    %c0_22 = arith.constant 0 : index
    %c0_23 = arith.constant 0 : index
    %18 = vector.load %arg7[%c0_21, %c0_22, %c0_23] : memref<1x16x16xbf16, #tpu.memory_space<vmem>>, vector<1x16x16xbf16>
    %19 = vector.shape_cast %18 : vector<1x16x16xbf16> to vector<16x16xbf16>
    %c0_24 = arith.constant 0 : index
    %c0_25 = arith.constant 0 : index
    %c0_26 = arith.constant 0 : index
    %20 = vector.load %arg8[%c0_24, %c0_25, %c0_26] : memref<1x16x1xf32, #tpu.memory_space<vmem>>, vector<1x16x1xf32>
    %21 = vector.shape_cast %20 : vector<1x16x1xf32> to vector<16x1xf32>
    %c0_27 = arith.constant 0 : index
    %c0_28 = arith.constant 0 : index
    %c0_29 = arith.constant 0 : index
    %22 = vector.load %arg9[%c0_27, %c0_28, %c0_29] : memref<1x16x1xf32, #tpu.memory_space<vmem>>, vector<1x16x1xf32>
    %23 = vector.shape_cast %22 : vector<1x16x1xf32> to vector<16x1xf32>
    %c0_30 = arith.constant 0 : index
    %c0_31 = arith.constant 0 : index
    %c0_32 = arith.constant 0 : index
    %24 = vector.load %arg13[%c0_30, %c0_31, %c0_32] : memref<2x128x256xbf16, #tpu.memory_space<vmem>>, vector<1x128x256xbf16>
    %25 = vector.shape_cast %24 : vector<1x128x256xbf16> to vector<128x256xbf16>
    %cst_33 = arith.constant dense<0.000000e+00> : vector<32x256xf32>
    %26 = tpu.matmul %7, %25, %cst_33 {dimension_numbers = #tpu.dot_dimension_numbers<[1], [0], [0], [1], [0, 0, 1, 1], [], []>} : vector<32x128xbf16>, vector<128x256xbf16>, vector<32x256xf32> -> vector<32x256xf32>
    %c0_34 = arith.constant 0 : index
    %c0_35 = arith.constant 0 : index
    %c0_36 = arith.constant 0 : index
    %27 = vector.load %arg14[%c0_34, %c0_35, %c0_36] : memref<2x1x256xf32, #tpu.memory_space<vmem>>, vector<1x1x256xf32>
    %28 = vector.shape_cast %27 : vector<1x1x256xf32> to vector<1x256xf32>
    %29 = vector.broadcast %28 : vector<1x256xf32> to vector<32x256xf32>
    %30 = arith.addf %26, %29 : vector<32x256xf32>
    %31 = arith.truncf %30 : vector<32x256xf32> to vector<32x256xbf16>
    %c0_37 = arith.constant 0 : index
    %c0_38 = arith.constant 0 : index
    %c0_39 = arith.constant 0 : index
    %32 = vector.load %arg15[%c0_37, %c0_38, %c0_39] : memref<2x128x128xbf16, #tpu.memory_space<vmem>>, vector<1x128x128xbf16>
    %33 = vector.shape_cast %32 : vector<1x128x128xbf16> to vector<128x128xbf16>
    %cst_40 = arith.constant dense<0.000000e+00> : vector<16x128xf32>
    %34 = tpu.matmul %9, %33, %cst_40 {dimension_numbers = #tpu.dot_dimension_numbers<[1], [0], [0], [1], [0, 0, 1, 1], [], []>} : vector<16x128xbf16>, vector<128x128xbf16>, vector<16x128xf32> -> vector<16x128xf32>
    %c0_41 = arith.constant 0 : index
    %c0_42 = arith.constant 0 : index
    %c0_43 = arith.constant 0 : index
    %35 = vector.load %arg16[%c0_41, %c0_42, %c0_43] : memref<2x1x128xf32, #tpu.memory_space<vmem>>, vector<1x1x128xf32>
    %36 = vector.shape_cast %35 : vector<1x1x128xf32> to vector<1x128xf32>
    %37 = vector.broadcast %36 : vector<1x128xf32> to vector<16x128xf32>
    %38 = arith.addf %34, %37 : vector<16x128xf32>
    %39 = arith.truncf %38 : vector<16x128xf32> to vector<16x128xbf16>
    %40 = vector.extract_strided_slice %31 {offsets = [0, 0], sizes = [32, 128], strides = [1, 1]} : vector<32x256xbf16> to vector<32x128xbf16>
    %cst_44 = arith.constant dense<0.000000e+00> : vector<32x128xf32>
    %41 = tpu.matmul %11, %40, %cst_44 {dimension_numbers = #tpu.dot_dimension_numbers<[1], [0], [0], [1], [0, 0, 1, 1], [], []>} : vector<32x32xbf16>, vector<32x128xbf16>, vector<32x128xf32> -> vector<32x128xf32>
    %42 = vector.extract_strided_slice %31 {offsets = [0, 128], sizes = [32, 128], strides = [1, 1]} : vector<32x256xbf16> to vector<32x128xbf16>
    %cst_45 = arith.constant dense<0.000000e+00> : vector<16x128xf32>
    %43 = tpu.matmul %13, %42, %cst_45 {dimension_numbers = #tpu.dot_dimension_numbers<[1], [0], [0], [1], [0, 0, 1, 1], [], []>} : vector<16x32xbf16>, vector<32x128xbf16>, vector<16x128xf32> -> vector<16x128xf32>
    %cst_46 = arith.constant dense<0.000000e+00> : vector<16x128xf32>
    %44 = tpu.matmul %15, %39, %cst_46 {dimension_numbers = #tpu.dot_dimension_numbers<[1], [0], [0], [1], [0, 0, 1, 1], [], []>} : vector<16x16xbf16>, vector<16x128xbf16>, vector<16x128xf32> -> vector<16x128xf32>
    %cst_47 = arith.constant 0.000000e+00 : f32
    %45 = vector.broadcast %cst_47 : f32 to vector<32x128xf32>
    %46 = arith.maximumf %41, %45 : vector<32x128xf32>
    %47 = arith.addf %43, %44 : vector<16x128xf32>
    %cst_48 = arith.constant 0.000000e+00 : f32
    %48 = vector.broadcast %cst_48 : f32 to vector<16x128xf32>
    %49 = arith.maximumf %47, %48 : vector<16x128xf32>
    %50 = arith.truncf %46 : vector<32x128xf32> to vector<32x128xbf16>
    %51 = arith.truncf %49 : vector<16x128xf32> to vector<16x128xbf16>
    %c1 = arith.constant 1 : index
    %c0_49 = arith.constant 0 : index
    %c0_50 = arith.constant 0 : index
    %52 = vector.load %arg13[%c1, %c0_49, %c0_50] : memref<2x128x256xbf16, #tpu.memory_space<vmem>>, vector<1x128x256xbf16>
    %53 = vector.shape_cast %52 : vector<1x128x256xbf16> to vector<128x256xbf16>
    %cst_51 = arith.constant dense<0.000000e+00> : vector<32x256xf32>
    %54 = tpu.matmul %50, %53, %cst_51 {dimension_numbers = #tpu.dot_dimension_numbers<[1], [0], [0], [1], [0, 0, 1, 1], [], []>} : vector<32x128xbf16>, vector<128x256xbf16>, vector<32x256xf32> -> vector<32x256xf32>
    %c1_52 = arith.constant 1 : index
    %c0_53 = arith.constant 0 : index
    %c0_54 = arith.constant 0 : index
    %55 = vector.load %arg14[%c1_52, %c0_53, %c0_54] : memref<2x1x256xf32, #tpu.memory_space<vmem>>, vector<1x1x256xf32>
    %56 = vector.shape_cast %55 : vector<1x1x256xf32> to vector<1x256xf32>
    %57 = vector.broadcast %56 : vector<1x256xf32> to vector<32x256xf32>
    %58 = arith.addf %54, %57 : vector<32x256xf32>
    %59 = arith.truncf %58 : vector<32x256xf32> to vector<32x256xbf16>
    %c1_55 = arith.constant 1 : index
    %c0_56 = arith.constant 0 : index
    %c0_57 = arith.constant 0 : index
    %60 = vector.load %arg15[%c1_55, %c0_56, %c0_57] : memref<2x128x128xbf16, #tpu.memory_space<vmem>>, vector<1x128x128xbf16>
    %61 = vector.shape_cast %60 : vector<1x128x128xbf16> to vector<128x128xbf16>
    %cst_58 = arith.constant dense<0.000000e+00> : vector<16x128xf32>
    %62 = tpu.matmul %51, %61, %cst_58 {dimension_numbers = #tpu.dot_dimension_numbers<[1], [0], [0], [1], [0, 0, 1, 1], [], []>} : vector<16x128xbf16>, vector<128x128xbf16>, vector<16x128xf32> -> vector<16x128xf32>
    %c1_59 = arith.constant 1 : index
    %c0_60 = arith.constant 0 : index
    %c0_61 = arith.constant 0 : index
    %63 = vector.load %arg16[%c1_59, %c0_60, %c0_61] : memref<2x1x128xf32, #tpu.memory_space<vmem>>, vector<1x1x128xf32>
    %64 = vector.shape_cast %63 : vector<1x1x128xf32> to vector<1x128xf32>
    %65 = vector.broadcast %64 : vector<1x128xf32> to vector<16x128xf32>
    %66 = arith.addf %62, %65 : vector<16x128xf32>
    %67 = arith.truncf %66 : vector<16x128xf32> to vector<16x128xbf16>
    %68 = vector.extract_strided_slice %59 {offsets = [0, 0], sizes = [32, 128], strides = [1, 1]} : vector<32x256xbf16> to vector<32x128xbf16>
    %cst_62 = arith.constant dense<0.000000e+00> : vector<32x128xf32>
    %69 = tpu.matmul %11, %68, %cst_62 {dimension_numbers = #tpu.dot_dimension_numbers<[1], [0], [0], [1], [0, 0, 1, 1], [], []>} : vector<32x32xbf16>, vector<32x128xbf16>, vector<32x128xf32> -> vector<32x128xf32>
    %70 = vector.extract_strided_slice %59 {offsets = [0, 128], sizes = [32, 128], strides = [1, 1]} : vector<32x256xbf16> to vector<32x128xbf16>
    %cst_63 = arith.constant dense<0.000000e+00> : vector<16x128xf32>
    %71 = tpu.matmul %13, %70, %cst_63 {dimension_numbers = #tpu.dot_dimension_numbers<[1], [0], [0], [1], [0, 0, 1, 1], [], []>} : vector<16x32xbf16>, vector<32x128xbf16>, vector<16x128xf32> -> vector<16x128xf32>
    %cst_64 = arith.constant dense<0.000000e+00> : vector<16x128xf32>
    %72 = tpu.matmul %15, %67, %cst_64 {dimension_numbers = #tpu.dot_dimension_numbers<[1], [0], [0], [1], [0, 0, 1, 1], [], []>} : vector<16x16xbf16>, vector<16x128xbf16>, vector<16x128xf32> -> vector<16x128xf32>
    %cst_65 = arith.constant 0.000000e+00 : f32
    %73 = vector.broadcast %cst_65 : f32 to vector<32x128xf32>
    %74 = arith.maximumf %69, %73 : vector<32x128xf32>
    %75 = arith.addf %71, %72 : vector<16x128xf32>
    %cst_66 = arith.constant 0.000000e+00 : f32
    %76 = vector.broadcast %cst_66 : f32 to vector<16x128xf32>
    %77 = arith.maximumf %75, %76 : vector<16x128xf32>
    %cst_67 = arith.constant dense<0.000000e+00> : vector<16x128xf32>
    %78 = tpu.matmul %17, %50, %cst_67 {dimension_numbers = #tpu.dot_dimension_numbers<[1], [0], [0], [1], [0, 0, 1, 1], [], []>} : vector<16x32xbf16>, vector<32x128xbf16>, vector<16x128xf32> -> vector<16x128xf32>
    %79 = arith.truncf %78 : vector<16x128xf32> to vector<16x128xbf16>
    %cst_68 = arith.constant dense<0.000000e+00> : vector<16x128xf32>
    %80 = tpu.matmul %19, %51, %cst_68 {dimension_numbers = #tpu.dot_dimension_numbers<[1], [0], [0], [1], [0, 0, 1, 1], [], []>} : vector<16x16xbf16>, vector<16x128xbf16>, vector<16x128xf32> -> vector<16x128xf32>
    %81 = arith.truncf %80 : vector<16x128xf32> to vector<16x128xbf16>
    %82 = tpu.concatenate %79, %81 in 1 : vector<16x128xbf16>, vector<16x128xbf16> -> vector<16x256xbf16>
    %c1_69 = arith.constant 1 : index
    %c0_70 = arith.constant 0 : index
    %c0_71 = arith.constant 0 : index
    %83 = vector.load %arg17[%c1_69, %c0_70, %c0_71] : memref<2x256x128xbf16, #tpu.memory_space<vmem>>, vector<1x256x128xbf16>
    %84 = vector.shape_cast %83 : vector<1x256x128xbf16> to vector<256x128xbf16>
    %cst_72 = arith.constant dense<0.000000e+00> : vector<16x128xf32>
    %85 = tpu.matmul %82, %84, %cst_72 {dimension_numbers = #tpu.dot_dimension_numbers<[1], [0], [0], [1], [0, 0, 1, 1], [], []>} : vector<16x256xbf16>, vector<256x128xbf16>, vector<16x128xf32> -> vector<16x128xf32>
    %c1_73 = arith.constant 1 : index
    %c0_74 = arith.constant 0 : index
    %c0_75 = arith.constant 0 : index
    %86 = vector.load %arg18[%c1_73, %c0_74, %c0_75] : memref<2x1x128xf32, #tpu.memory_space<vmem>>, vector<1x1x128xf32>
    %87 = vector.shape_cast %86 : vector<1x1x128xf32> to vector<1x128xf32>
    %88 = vector.broadcast %21 : vector<16x1xf32> to vector<16x128xf32>
    %89 = vector.broadcast %87 : vector<1x128xf32> to vector<16x128xf32>
    %90 = arith.mulf %88, %89 : vector<16x128xf32>
    %91 = arith.addf %85, %90 : vector<16x128xf32>
    %c1_76 = arith.constant 1 : index
    %c0_77 = arith.constant 0 : index
    %c0_78 = arith.constant 0 : index
    %92 = vector.load %arg19[%c1_76, %c0_77, %c0_78] : memref<2x1x128xf32, #tpu.memory_space<vmem>>, vector<1x1x128xf32>
    %93 = vector.shape_cast %92 : vector<1x1x128xf32> to vector<1x128xf32>
    %94 = vector.broadcast %23 : vector<16x1xf32> to vector<16x128xf32>
    %95 = vector.broadcast %93 : vector<1x128xf32> to vector<16x128xf32>
    %96 = arith.mulf %94, %95 : vector<16x128xf32>
    %97 = arith.addf %91, %96 : vector<16x128xf32>
    %cst_79 = arith.constant 0.000000e+00 : f32
    %98 = vector.broadcast %cst_79 : f32 to vector<16x128xf32>
    %99 = arith.maximumf %97, %98 : vector<16x128xf32>
    %cst_80 = arith.constant dense<0xFF800000> : vector<128xf32>
    %100 = vector.multi_reduction <maximumf>, %99, %cst_80 [0] : vector<16x128xf32> to vector<128xf32>
    %101 = vector.shape_cast %100 : vector<128xf32> to vector<1x128xf32>
    %cst_81 = arith.constant dense<0xFF800000> : vector<128xf32>
    %102 = vector.multi_reduction <maximumf>, %74, %cst_81 [0] : vector<32x128xf32> to vector<128xf32>
    %103 = vector.shape_cast %102 : vector<128xf32> to vector<1x128xf32>
    %cst_82 = arith.constant dense<0xFF800000> : vector<128xf32>
    %104 = vector.multi_reduction <maximumf>, %77, %cst_82 [0] : vector<16x128xf32> to vector<128xf32>
    %105 = vector.shape_cast %104 : vector<128xf32> to vector<1x128xf32>
    %c0_83 = arith.constant 0 : index
    %c0_84 = arith.constant 0 : index
    %106 = vector.load %arg20[%c0_83, %c0_84] : memref<1x128xf32, #tpu.memory_space<vmem>>, vector<1x128xf32>
    %107 = arith.mulf %101, %106 : vector<1x128xf32>
    %c0_85 = arith.constant 0 : index
    %c0_86 = arith.constant 0 : index
    %108 = vector.load %arg21[%c0_85, %c0_86] : memref<1x128xf32, #tpu.memory_space<vmem>>, vector<1x128xf32>
    %109 = arith.mulf %103, %108 : vector<1x128xf32>
    %110 = arith.addf %107, %109 : vector<1x128xf32>
    %c0_87 = arith.constant 0 : index
    %c0_88 = arith.constant 0 : index
    %111 = vector.load %arg22[%c0_87, %c0_88] : memref<1x128xf32, #tpu.memory_space<vmem>>, vector<1x128xf32>
    %112 = arith.mulf %105, %111 : vector<1x128xf32>
    %113 = arith.addf %110, %112 : vector<1x128xf32>
    %cst_89 = arith.constant dense<0.000000e+00> : vector<1xf32>
    %114 = vector.multi_reduction <add>, %113, %cst_89 [1] : vector<1x128xf32> to vector<1xf32>
    %115 = vector.shape_cast %114 : vector<1xf32> to vector<1x1xf32>
    %c0_90 = arith.constant 0 : index
    %c0_91 = arith.constant 0 : index
    %116 = vector.load %arg23[%c0_90, %c0_91] : memref<1x1xf32, #tpu.memory_space<vmem>>, vector<1x1xf32>
    %117 = arith.addf %115, %116 : vector<1x1xf32>
    %c0_92 = arith.constant 0 : index
    %c0_93 = arith.constant 0 : index
    %c0_94 = arith.constant 0 : index
    %118 = vector.load %arg10[%c0_92, %c0_93, %c0_94] : memref<1x1x1xf32, #tpu.memory_space<vmem>>, vector<1x1x1xf32>
    %119 = vector.shape_cast %118 : vector<1x1x1xf32> to vector<1x1xf32>
    %cst_95 = arith.constant 0.000000e+00 : f32
    %120 = vector.broadcast %cst_95 : f32 to vector<1x1xf32>
    %121 = arith.maximumf %117, %120 : vector<1x1xf32>
    %122 = arith.mulf %117, %119 : vector<1x1xf32>
    %123 = arith.subf %121, %122 : vector<1x1xf32>
    %124 = math.absf %117 : vector<1x1xf32>
    %cst_96 = arith.constant 0.000000e+00 : f32
    %125 = vector.broadcast %cst_96 : f32 to vector<1x1xf32>
    %126 = arith.subf %125, %124 : vector<1x1xf32>
    %127 = math.exp %126 : vector<1x1xf32>
    %128 = math.log1p %127 : vector<1x1xf32>
    %129 = arith.addf %123, %128 : vector<1x1xf32>
    %c0_97 = arith.constant 0 : index
    %c0_98 = arith.constant 0 : index
    %c0_99 = arith.constant 0 : index
    %130 = vector.load %arg24[%c0_97, %c0_98, %c0_99] : memref<1x1x1xf32, #tpu.memory_space<vmem>>, vector<1x1x1xf32>
    %131 = vector.shape_cast %130 : vector<1x1x1xf32> to vector<1x1xf32>
    %132 = vector.shape_cast %129 : vector<1x1xf32> to vector<1x1x1xf32>
    tpu.vector_store %arg24[%c0_97, %c0_98, %c0_99], %132 {strides = array<i32>} : memref<1x1x1xf32, #tpu.memory_space<vmem>>, vector<1x1x1xf32>,
    %cst_100 = arith.constant 0.000000e+00 : f32
    %133 = vector.broadcast %cst_100 : f32 to vector<1x1xf32>
    %134 = arith.subf %133, %117 : vector<1x1xf32>
    %135 = math.exp %134 : vector<1x1xf32>
    %cst_101 = arith.constant 1.000000e+00 : f32
    %136 = vector.broadcast %cst_101 : f32 to vector<1x1xf32>
    %137 = arith.addf %136, %135 : vector<1x1xf32>
    %cst_102 = arith.constant 1.000000e+00 : f32
    %138 = vector.broadcast %cst_102 : f32 to vector<1x1xf32>
    %139 = arith.divf %138, %137 : vector<1x1xf32>
    %c0_103 = arith.constant 0 : index
    %c0_104 = arith.constant 0 : index
    %c0_105 = arith.constant 0 : index
    %140 = vector.load %arg25[%c0_103, %c0_104, %c0_105] : memref<1x1x1xf32, #tpu.memory_space<vmem>>, vector<1x1x1xf32>
    %141 = vector.shape_cast %140 : vector<1x1x1xf32> to vector<1x1xf32>
    %142 = vector.shape_cast %139 : vector<1x1xf32> to vector<1x1x1xf32>
    tpu.vector_store %arg25[%c0_103, %c0_104, %c0_105], %142 {strides = array<i32>} : memref<1x1x1xf32, #tpu.memory_space<vmem>>, vector<1x1x1xf32>,
    return
  }
  func.func @transform_0(%arg0: i32) -> (i32, i32, i32) {
    %c0_i32 = arith.constant 0 : i32
    %c0_i32_0 = arith.constant 0 : i32
    %c0_i32_1 = arith.constant 0 : i32
    return %arg0, %c0_i32, %c0_i32_0 : i32, i32, i32
  }
  func.func @transform_1(%arg0: i32) -> (i32, i32, i32) {
    %c0_i32 = arith.constant 0 : i32
    %c0_i32_0 = arith.constant 0 : i32
    %c0_i32_1 = arith.constant 0 : i32
    return %arg0, %c0_i32, %c0_i32_0 : i32, i32, i32
  }
  func.func @transform_2(%arg0: i32) -> (i32, i32, i32) {
    %c0_i32 = arith.constant 0 : i32
    %c0_i32_0 = arith.constant 0 : i32
    %c0_i32_1 = arith.constant 0 : i32
    return %arg0, %c0_i32, %c0_i32_0 : i32, i32, i32
  }
  func.func @transform_3(%arg0: i32) -> (i32, i32, i32) {
    %c0_i32 = arith.constant 0 : i32
    %c0_i32_0 = arith.constant 0 : i32
    %c0_i32_1 = arith.constant 0 : i32
    return %arg0, %c0_i32, %c0_i32_0 : i32, i32, i32
  }
  func.func @transform_4(%arg0: i32) -> (i32, i32, i32) {
    %c0_i32 = arith.constant 0 : i32
    %c0_i32_0 = arith.constant 0 : i32
    %c0_i32_1 = arith.constant 0 : i32
    return %arg0, %c0_i32, %c0_i32_0 : i32, i32, i32
  }
  func.func @transform_5(%arg0: i32) -> (i32, i32, i32) {
    %c0_i32 = arith.constant 0 : i32
    %c0_i32_0 = arith.constant 0 : i32
    %c0_i32_1 = arith.constant 0 : i32
    return %arg0, %c0_i32, %c0_i32_0 : i32, i32, i32
  }
  func.func @transform_6(%arg0: i32) -> (i32, i32, i32) {
    %c0_i32 = arith.constant 0 : i32
    %c0_i32_0 = arith.constant 0 : i32
    %c0_i32_1 = arith.constant 0 : i32
    return %arg0, %c0_i32, %c0_i32_0 : i32, i32, i32
  }
  func.func @transform_7(%arg0: i32) -> (i32, i32, i32) {
    %c0_i32 = arith.constant 0 : i32
    %c0_i32_0 = arith.constant 0 : i32
    %c0_i32_1 = arith.constant 0 : i32
    return %arg0, %c0_i32, %c0_i32_0 : i32, i32, i32
  }
  func.func @transform_8(%arg0: i32) -> (i32, i32, i32) {
    %c0_i32 = arith.constant 0 : i32
    %c0_i32_0 = arith.constant 0 : i32
    %c0_i32_1 = arith.constant 0 : i32
    return %arg0, %c0_i32, %c0_i32_0 : i32, i32, i32
  }
  func.func @transform_9(%arg0: i32) -> (i32, i32, i32) {
    %c0_i32 = arith.constant 0 : i32
    %c0_i32_0 = arith.constant 0 : i32
    %c0_i32_1 = arith.constant 0 : i32
    return %arg0, %c0_i32, %c0_i32_0 : i32, i32, i32
  }
  func.func @transform_10(%arg0: i32) -> (i32, i32) {
    %c0_i32 = arith.constant 0 : i32
    %c0_i32_0 = arith.constant 0 : i32
    %c0_i32_1 = arith.constant 0 : i32
    return %c0_i32, %c0_i32_0 : i32, i32
  }
  func.func @transform_11(%arg0: i32) -> (i32, i32) {
    %c0_i32 = arith.constant 0 : i32
    %c0_i32_0 = arith.constant 0 : i32
    %c0_i32_1 = arith.constant 0 : i32
    return %c0_i32, %c0_i32_0 : i32, i32
  }
  func.func @transform_12(%arg0: i32) -> (i32, i32, i32) {
    %c0_i32 = arith.constant 0 : i32
    %c0_i32_0 = arith.constant 0 : i32
    %c0_i32_1 = arith.constant 0 : i32
    %c0_i32_2 = arith.constant 0 : i32
    return %c0_i32, %c0_i32_0, %c0_i32_1 : i32, i32, i32
  }
  func.func @transform_13(%arg0: i32) -> (i32, i32, i32) {
    %c0_i32 = arith.constant 0 : i32
    %c0_i32_0 = arith.constant 0 : i32
    %c0_i32_1 = arith.constant 0 : i32
    %c0_i32_2 = arith.constant 0 : i32
    return %c0_i32, %c0_i32_0, %c0_i32_1 : i32, i32, i32
  }
  func.func @transform_14(%arg0: i32) -> (i32, i32, i32) {
    %c0_i32 = arith.constant 0 : i32
    %c0_i32_0 = arith.constant 0 : i32
    %c0_i32_1 = arith.constant 0 : i32
    %c0_i32_2 = arith.constant 0 : i32
    return %c0_i32, %c0_i32_0, %c0_i32_1 : i32, i32, i32
  }
  func.func @transform_15(%arg0: i32) -> (i32, i32, i32) {
    %c0_i32 = arith.constant 0 : i32
    %c0_i32_0 = arith.constant 0 : i32
    %c0_i32_1 = arith.constant 0 : i32
    %c0_i32_2 = arith.constant 0 : i32
    return %c0_i32, %c0_i32_0, %c0_i32_1 : i32, i32, i32
  }
  func.func @transform_16(%arg0: i32) -> (i32, i32, i32) {
    %c0_i32 = arith.constant 0 : i32
    %c0_i32_0 = arith.constant 0 : i32
    %c0_i32_1 = arith.constant 0 : i32
    %c0_i32_2 = arith.constant 0 : i32
    return %c0_i32, %c0_i32_0, %c0_i32_1 : i32, i32, i32
  }
  func.func @transform_17(%arg0: i32) -> (i32, i32, i32) {
    %c0_i32 = arith.constant 0 : i32
    %c0_i32_0 = arith.constant 0 : i32
    %c0_i32_1 = arith.constant 0 : i32
    %c0_i32_2 = arith.constant 0 : i32
    return %c0_i32, %c0_i32_0, %c0_i32_1 : i32, i32, i32
  }
  func.func @transform_18(%arg0: i32) -> (i32, i32, i32) {
    %c0_i32 = arith.constant 0 : i32
    %c0_i32_0 = arith.constant 0 : i32
    %c0_i32_1 = arith.constant 0 : i32
    %c0_i32_2 = arith.constant 0 : i32
    return %c0_i32, %c0_i32_0, %c0_i32_1 : i32, i32, i32
  }
  func.func @transform_19(%arg0: i32) -> (i32, i32) {
    %c0_i32 = arith.constant 0 : i32
    %c0_i32_0 = arith.constant 0 : i32
    %c0_i32_1 = arith.constant 0 : i32
    return %c0_i32, %c0_i32_0 : i32, i32
  }
  func.func @transform_20(%arg0: i32) -> (i32, i32) {
    %c0_i32 = arith.constant 0 : i32
    %c0_i32_0 = arith.constant 0 : i32
    %c0_i32_1 = arith.constant 0 : i32
    return %c0_i32, %c0_i32_0 : i32, i32
  }
  func.func @transform_21(%arg0: i32) -> (i32, i32) {
    %c0_i32 = arith.constant 0 : i32
    %c0_i32_0 = arith.constant 0 : i32
    %c0_i32_1 = arith.constant 0 : i32
    return %c0_i32, %c0_i32_0 : i32, i32
  }
  func.func @transform_22(%arg0: i32) -> (i32, i32) {
    %c0_i32 = arith.constant 0 : i32
    %c0_i32_0 = arith.constant 0 : i32
    %c0_i32_1 = arith.constant 0 : i32
    return %c0_i32, %c0_i32_0 : i32, i32
  }
  func.func @transform_23(%arg0: i32) -> (i32, i32, i32) {
    %c0_i32 = arith.constant 0 : i32
    %c0_i32_0 = arith.constant 0 : i32
    %c0_i32_1 = arith.constant 0 : i32
    return %arg0, %c0_i32, %c0_i32_0 : i32, i32, i32
  }
  func.func @transform_24(%arg0: i32) -> (i32, i32, i32) {
    %c0_i32 = arith.constant 0 : i32
    %c0_i32_0 = arith.constant 0 : i32
    %c0_i32_1 = arith.constant 0 : i32
    return %arg0, %c0_i32, %c0_i32_0 : i32, i32, i32
  }
}

</mosaic_0001>

<bundles_post_ra>
// kernel: tpu_custom_call.1
= control target key start
LH: loop header
LB: loop body
LE: loop exit
PB: predicated region body
PF: predicated region fallthrough
CT: control target
= control target key end

     0   :  { %s3819_s0 = inlined_call_operand.vmem [shape: bf16[2,32,64], index: 0, kind: input, shape index: {}]   ;;  %s3820_s1 = inlined_call_operand.hbm [shape: bf16[2,16,128], index: 1, kind: input, shape index: {}]   ;;  %s3821_s2 = inlined_call_operand.vmem [shape: bf16[2,32,32], index: 2, kind: input, shape index: {}]   ;;  %s3822_s3 = inlined_call_operand.hbm [shape: bf16[2,16,32], index: 3, kind: input, shape index: {}]   ;;  %s3823_s4 = inlined_call_operand.hbm [shape: bf16[2,16,16], index: 4, kind: input, shape index: {}]   ;;  %s3824_s5 = inlined_call_operand.hbm [shape: bf16[2,16,32], index: 5, kind: input, shape index: {}]   ;;  %s3825_s6 = inlined_call_operand.hbm [shape: bf16[2,16,16], index: 6, kind: input, shape index: {}]   ;;  %s3826_s7 = inlined_call_operand.vmem [shape: f32[2,16,1], index: 7, kind: input, shape index: {}]   ;;  %s3827_s8 = inlined_call_operand.vmem [shape: f32[2,16,1], index: 8, kind: input, shape index: {}]   ;;  %s3828_s9 = inlined_call_operand.vmem [shape: f32[2,1,1], index: 9, kind: input, shape index: {}]   ;;  %s3829_s10 = inlined_call_operand.hbm [shape: bf16[64,128], index: 10, kind: input, shape index: {}]   ;;  %s3830_s11 = inlined_call_operand.vmem [shape: f32[1,128], index: 11, kind: input, shape index: {}]   ;;  %s3831_s12 = inlined_call_operand.hbm [shape: bf16[2,128,256], index: 12, kind: input, shape index: {}]   ;;  %s3832_s13 = inlined_call_operand.vmem [shape: f32[2,1,256], index: 13, kind: input, shape index: {}]   ;;  %s3833_s14 = inlined_call_operand.hbm [shape: bf16[2,128,128], index: 14, kind: input, shape index: {}]   ;;  %s3834_s15 = inlined_call_operand.vmem [shape: f32[2,1,128], index: 15, kind: input, shape index: {}]   ;;  %s3835_s16 = inlined_call_operand.hbm [shape: bf16[2,256,128], index: 16, kind: input, shape index: {}]   ;;  %s3836_s17 = inlined_call_operand.vmem [shape: f32[2,1,128], index: 17, kind: input, shape index: {}]   ;;  %s3837_s18 = inlined_call_operand.vmem [shape: f32[2,1,128], index: 18, kind: input, shape index: {}]   ;;  %s3838_s19 = inlined_call_operand.vmem [shape: f32[1,128], index: 19, kind: input, shape index: {}]   ;;  %s3839_s20 = inlined_call_operand.vmem [shape: f32[1,128], index: 20, kind: input, shape index: {}]   ;;  %s3840_s21 = inlined_call_operand.vmem [shape: f32[1,128], index: 21, kind: input, shape index: {}]   ;;  %s3841_s22 = inlined_call_operand.<no memory space> [shape: f32[1,1], index: 22, kind: input, shape index: {}]   ;;  %s3842_s23 = inlined_call_operand.vmem [shape: f32[2,1,1], index: 23, kind: output, shape index: {0}]   ;;  %s3843_s24 = inlined_call_operand.vmem [shape: f32[2,1,1], index: 24, kind: output, shape index: {1}]  }
   0x1   :  { %3858 = sst [smem:[#allocation24_spill]] %s3819_s0  ;;  %v30_v0 = vstv %s3841_s22 }
   0x2   :  { %3859 = sst [smem:[#allocation25_spill]] %s3820_s1  ;;  %31 = vst [vmem:[#allocation2] sm:$0x1] %v30_v0 }
   0x3   :  { %3860 = sst [smem:[#allocation26_spill]] %s3821_s2 }
   0x4   :  { %3861 = sst [smem:[#allocation27_spill]] %s3822_s3 }
   0x5   :  { %3862 = sst [smem:[#allocation28_spill]] %s3823_s4 }
   0x6   :  { %3863 = sst [smem:[#allocation29_spill]] %s3824_s5 }
   0x7   :  { %3864 = sst [smem:[#allocation30_spill]] %s3825_s6 }
   0x8   :  { %3865 = sst [smem:[#allocation31_spill]] %s3826_s7 }
   0x9   :  { %3866 = sst [smem:[#allocation32_spill]] %s3827_s8 }
   0xa   :  { %3867 = sst [smem:[#allocation33_spill]] %s3828_s9 }
   0xb   :  { %3868 = sst [smem:[#allocation34_spill]] %s3829_s10 }
   0xc   :  { %3869 = sst [smem:[#allocation35_spill]] %s3831_s12 }
   0xd   :  { %3870 = sst [smem:[#allocation36_spill]] %s3833_s14 }
   0xe   :  { %3871 = sst [smem:[#allocation37_spill]] %s3834_s15 }
   0xf   :  { %3872 = sst [smem:[#allocation38_spill]] %s3835_s16 }
  0x10   :  { %3873 = sst [smem:[#allocation39_spill]] %s3836_s17 }
  0x11   :  { %3874 = sst [smem:[#allocation40_spill]] %s3837_s18 }
  0x12   :  { %3875 = sst [smem:[#allocation41_spill]] %s3838_s19 }
  0x13   :  { %3876 = sst [smem:[#allocation42_spill]] %s3839_s20 }
  0x14   :  { %3877 = sst [smem:[#allocation43_spill]] %s3840_s21 }
  0x15   :  { %3878 = sst [smem:[#allocation44_spill]] %s3842_s23 }
  0x16   :  { %3879 = sst [smem:[#allocation45_spill]] %s3843_s24 }
  0x17   :  { %32 = vsyncpa [#allocation4], 0 }
  0x18   :  { %34 = vsyncpa [#allocation4 + $0x1], 0 }
  0x19   :  { %35 = vsyncpa [#allocation6], 0 }
  0x1a   :  { %37 = vsyncpa [#allocation6 + $0x1], 0 }
  0x1b   :  { %38 = vsyncpa [#allocation9], 0 }
  0x1c   :  { %40 = vsyncpa [#allocation9 + $0x1], 0 }
  0x1d   :  { %41 = vsyncpa [#allocation12], 0 }
  0x1e   :  { %42 = vsyncpa [#allocation15], 0  ;;  %s3461_s27 = smov 0   ;;  %s3463_s28 = smov 0  }
  0x1f   :  { %s3465_s6 = smov 0   ;;  %s3467_s2 = smov 0  }
  0x20 LB: > { %s3480_s22 = sadd.s32 4294967295, %s3322_s2   ;;  %s3483_s29 = sadd.s32 1, %s3322_s2   ;;  %s3322_s2 = sphi %s3467_s2, %s3912_s2   ;;  %s3318_s6 = sphi %s3465_s6, %s3916_s6   ;;  %s3314_s28 = sphi %s3463_s28, %s3915_s28   ;;  %s3310_s27 = sphi %s3461_s27, %s3914_s27  }
  0x21   : > { %3880 = sst [smem:[#allocation22_spill]] %s3483_s29  ;;  %s78_s0 = ssub.s32 %s3322_s2, %s3483_s29 }
  0x22   : > { %s81_s7 = sadd.s32 1, %s3318_s6  ;;  %p79_p0 = scmp.eq.s32.totalorder %s78_s0, 0 }
  0x23   : > { %p88_p1 = scmp.ne.s32.totalorder %s3318_s6, %s3314_s28  ;;  %p94_p2 = scmp.ne.s32.totalorder %s3314_s28, %s3310_s27 }
  0x24   : > { %p95_p3 = scmp.eq.s32.totalorder %s3480_s22, 0  ;;  %p2431_p5 = scmp.ge.s32.totalorder %s3322_s2, 1 }
  0x25   : > { %s3493_s30 = scalar_select %p79_p0, %s3318_s6, %s81_s7  }
  0x26   : > { %p3497_p4 = por %p95_p3, %p94_p2  ;;  %p638_p6 = scmp.lt.s32.totalorder %s3322_s2, 3 }
  0x27   : > { %3881 = sst [smem:[#allocation23_spill]] %s3493_s30  ;;  %s3324_s5 = smov [#allocation11]  }
  0x28   : > { %s3883_s10 = sld [smem:[#allocation34_spill]]  ;;  %p3506_p7 = pnand %p2431_p5, %p638_p6 }
  0x29   : > { %s651_s26 = sshll.u32 %s3324_s5, 4  ;;  %s3886_s14 = sld [smem:[#allocation36_spill]]  ;;  %s652_s26 = int_to_ptr.vmem [resolvable:$true] %s651_s26 }
  0x2a   : > { %p2908_p8 = pneg %p3506_p7  ;;  %s3325_s8 = smov [#allocation14]  }
  0x2b   : > { %s685_s5 = sshll.u32 %s3325_s8, 4  ;;  %s3853_s30 = smov 4   ;;  %s686_s5 = int_to_ptr.vmem [resolvable:$true] %s685_s5 }
  0x2c   : > { %p3514_p9 = pnand %p2908_p8, %p95_p3  ;;  %p89_p10 = scmp.eq.s32.totalorder %s3322_s2, 0 }
  0x2d   : > { %p2941_p12 = scmp.lt.s32.totalorder %s3322_s2, 2  ;;  %s3855_s0 = sand.u32 1, %s3318_s6  }
  0x2e   : > { %s649_s4 = sshll.u32 %s3883_s10, 4  ;;  %s3851_s10 = smov 64   ;;  %s650_s4 = int_to_ptr.hbm [resolvable:$true] %s649_s4 }
  0x2f   : > { %s683_s25 = sshll.u32 %s3886_s14, 4  ;;  %p90_p11 = por %p89_p10, %p88_p1  ;;  %s684_s25 = int_to_ptr.hbm [resolvable:$true] %s683_s25 }
  0x30   : > { %2911 = dma.hbm_to_vmem [thread:$0]  (!%p3514_p9), %s650_s4, 512, %s652_s26, [#allocation12], %s3851_s10, %s3851_s10, %s3853_s30  }
  0x31   : > { %2917 = dma.hbm_to_vmem [thread:$0]  (!%p3514_p9), %s684_s25, 2048, %s686_s5, [#allocation15], %s3851_s10, %s3851_s10, %s3853_s30  }
  0x32   : > { %s3538_s7 = sshll.u32 %s3322_s2, 3  ;;  %s3542_s8 = sshll.u32 %s3855_s0, 3 }
  0x33   : > { %p3544_p13 = pnand %p2941_p12, %p90_p11  ;;  %s772_s26 = sand.u32 1, %s3322_s2  }
  0x34   : > { %s3888_s25 = sld [smem:[#allocation27_spill]]  ;;  %s776_s10 = scalar_lea.vmem [#allocation5], %s3542_s8 }
  0x35   : > { %s784_s30 = sshll.u32 %s776_s10, 4  ;;  %s3554_s23 = scalar_lea.sflag [#allocation6], %s772_s26  ;;  %s785_s30 = int_to_ptr.vmem [resolvable:$true] %s784_s30 }
  0x36   : > { %p3558_p1 = pneg %p3544_p13 }
  0x3a   : > { %s781_s5 = scalar_lea.hbm %s3888_s25, %s3538_s7  ;;  %s3069_s2 = scalar_lea.hbm %s3888_s25, 16 }
  0x3b   : > { %s782_s24 = sshll.u32 %s781_s5, 4  ;;  %s783_s24 = int_to_ptr.hbm [resolvable:$true] %s782_s24 }
  0x3c   : > { %s3062_s0 = sshra.s32 %s783_s24, 4  ;;  %s3063_s0 = int_to_ptr.hbm [resolvable:$true] %s3062_s0 }
  0x3d   : > { %s3064_s9 = scalar_lea.hbm %s3063_s0, 8  ;;  %p3070_p6 = scmp.lt.s32.totalorder %s3063_s0, %s3888_s25 }
  0x3e   : > { %p3065_p0 = scmp.ne.s32.totalorder %s3063_s0, %s3064_s9  ;;  %p3071_p8 = scmp.lt.s32.totalorder %s3069_s2, %s3064_s9 }
  0x40   : > { %p3067_p2 = pnand %p3558_p1, %p3065_p0  ;;  %p3072_p10 = por %p3071_p8, %p3070_p6 }
  0x42   : > { %p3068_p5 = pneg %p3067_p2 }
  0x44   : > { %p3073_p11 = pnand %p3072_p10, %p3068_p5 }
  0x46   : > { %3076 = shalt.err (!%p3073_p11)
}
  0x47   : > { %s3890_s20 = smov 4   ;;  %s3891_s19 = smov 64  }
  0x48   : > { %2927 = dma.hbm_to_vmem [thread:$0]  (!%p3544_p13), %s783_s24, 128, %s785_s30, %s3554_s23, %s3891_s19, %s3891_s19, %s3890_s20  }
  0x49   : > { %s3892_s18 = sld [smem:[#allocation29_spill]]  ;;  %s820_s0 = scalar_lea.vmem [#allocation8], %s3542_s8 }
  0x4a   : > { %s828_s9 = sshll.u32 %s820_s0, 4  ;;  %s3581_s2 = scalar_lea.sflag [#allocation9], %s772_s26  ;;  %s829_s9 = int_to_ptr.vmem [resolvable:$true] %s828_s9 }
  0x4f   : > { %s825_s17 = scalar_lea.hbm %s3892_s18, %s3538_s7  ;;  %s3099_s30 = scalar_lea.hbm %s3892_s18, 16 }
  0x50   : > { %s826_s29 = sshll.u32 %s825_s17, 4  ;;  %s827_s29 = int_to_ptr.hbm [resolvable:$true] %s826_s29 }
  0x51   : > { %s3092_s5 = sshra.s32 %s827_s29, 4  ;;  %s3093_s5 = int_to_ptr.hbm [resolvable:$true] %s3092_s5 }
  0x52   : > { %s3094_s25 = scalar_lea.hbm %s3093_s5, 8  ;;  %p3100_p5 = scmp.lt.s32.totalorder %s3093_s5, %s3892_s18 }
  0x53   : > { %p3095_p12 = scmp.ne.s32.totalorder %s3093_s5, %s3094_s25  ;;  %p3101_p6 = scmp.lt.s32.totalorder %s3099_s30, %s3094_s25 }
  0x55   : > { %p3097_p0 = pnand %p3095_p12, %p3558_p1  ;;  %p3102_p8 = por %p3101_p6, %p3100_p5 }
  0x57   : > { %p3098_p2 = pneg %p3097_p0 }
  0x59   : > { %p3103_p10 = pnand %p3102_p8, %p3098_p2 }
  0x5b   : > { %3106 = shalt.err (!%p3103_p10)
}
  0x5c   : > { %2933 = dma.hbm_to_vmem [thread:$0]  (!%p3544_p13), %s827_s29, 128, %s829_s9, %s3581_s2, %s3891_s19, %s3891_s19, %s3890_s20  }
  0x5d   : > { %s3893_s12 = sld [smem:[#allocation35_spill]]  ;;  %s3328_s25 = smov [#allocation13]  }
  0x5e   : > { %s668_s0 = sshll.u32 %s3328_s25, 4  ;;  %s3894_s16 = sld [smem:[#allocation38_spill]]  ;;  %s669_s0 = int_to_ptr.vmem [resolvable:$true] %s668_s0 }
  0x5f   : > { %s3329_s14 = smov 128   ;;  %s3330_s10 = smov 8  }
  0x60   : > { %s3331_s29 = smov [#allocation16]   ;;  %s3895_s25 = sld [smem:[#allocation25_spill]] }
  0x61   : > { %s702_s9 = sshll.u32 %s3331_s29, 4  ;;  %s746_s24 = scalar_lea.vmem [#allocation3], %s3542_s8  ;;  %s703_s9 = int_to_ptr.vmem [resolvable:$true] %s702_s9 }
  0x63   : > { %s666_s26 = sshll.u32 %s3893_s12, 4  ;;  %s754_s12 = sshll.u32 %s746_s24, 4  ;;  %s667_s26 = int_to_ptr.hbm [resolvable:$true] %s666_s26  ;;  %s755_s12 = int_to_ptr.vmem [resolvable:$true] %s754_s12 }
  0x64   : > { %s700_s30 = sshll.u32 %s3894_s16, 4  ;;  %s701_s30 = int_to_ptr.hbm [resolvable:$true] %s700_s30 }
  0x65   : > { %2914 = dma.hbm_to_vmem [thread:$0]  (!%p3514_p9), %s667_s26, 4096, %s669_s0, [#allocation12], %s3329_s14, %s3329_s14, %s3330_s10  }
  0x66   : > { %2920 = dma.hbm_to_vmem [thread:$0]  (!%p3514_p9), %s701_s30, 4096, %s703_s9, [#allocation15], %s3891_s19, %s3891_s19, %s3890_s20  }
  0x67   : > { %s751_s5 = scalar_lea.hbm %s3895_s25, %s3538_s7  ;;  %s3896_s26 = sand.u32 1, %s3318_s6  }
  0x68   : > { %s752_s16 = sshll.u32 %s751_s5, 4  ;;  %s743_s0 = scalar_lea.sflag [#allocation4], %s3896_s26  ;;  %s753_s16 = int_to_ptr.hbm [resolvable:$true] %s752_s16 }
  0x69   : > { %s3182_s14 = sshra.s32 %s753_s16, 4  ;;  %s3189_s29 = scalar_lea.hbm %s3895_s25, 16  ;;  %s3183_s14 = int_to_ptr.hbm [resolvable:$true] %s3182_s14 }
  0x6a   : > { %s3184_s10 = scalar_lea.hbm %s3183_s14, 8  ;;  %p3190_p9 = scmp.lt.s32.totalorder %s3183_s14, %s3895_s25 }
  0x6b   : > { %p3185_p11 = scmp.ne.s32.totalorder %s3183_s14, %s3184_s10  ;;  %p3191_p2 = scmp.lt.s32.totalorder %s3189_s29, %s3184_s10 }
  0x6d   : > { %p3187_p12 = pnand %p3185_p11, %p3558_p1  ;;  %p3192_p5 = por %p3191_p2, %p3190_p9 }
  0x6f   : > { %p3188_p0 = pneg %p3187_p12 }
  0x71   : > { %p3193_p6 = pnand %p3192_p5, %p3188_p0 }
  0x73   : > { %3196 = shalt.err (!%p3193_p6)
}
  0x74   : > { %2924 = dma.hbm_to_vmem [thread:$0]  (!%p3544_p13), %s753_s16, 128, %s755_s12, %s743_s0, %s3891_s19, %s3891_s19, %s3890_s20  }
  0x75   : > { %s3897_s24 = sld [smem:[#allocation28_spill]]  ;;  %s798_s27 = scalar_lea.vmem [#allocation7], %s3542_s8 }
  0x76   : > { %s806_s30 = sshll.u32 %s798_s27, 4  ;;  %s807_s30 = int_to_ptr.vmem [resolvable:$true] %s806_s30 }
  0x7b   : > { %s803_s26 = scalar_lea.hbm %s3897_s24, %s3538_s7  ;;  %s3219_s12 = scalar_lea.hbm %s3897_s24, 16 }
  0x7c   : > { %s804_s14 = sshll.u32 %s803_s26, 4  ;;  %s805_s14 = int_to_ptr.hbm [resolvable:$true] %s804_s14 }
  0x7d   : > { %s3212_s10 = sshra.s32 %s805_s14, 4  ;;  %s3213_s10 = int_to_ptr.hbm [resolvable:$true] %s3212_s10 }
  0x7e   : > { %s3214_s29 = scalar_lea.hbm %s3213_s10, 8  ;;  %p3220_p12 = scmp.lt.s32.totalorder %s3213_s10, %s3897_s24 }
  0x7f   : > { %p3215_p8 = scmp.ne.s32.totalorder %s3213_s10, %s3214_s29  ;;  %p3221_p0 = scmp.lt.s32.totalorder %s3219_s12, %s3214_s29 }
  0x81   : > { %p3217_p10 = pnand %p3215_p8, %p3558_p1  ;;  %p3222_p9 = por %p3221_p0, %p3220_p12 }
  0x83   : > { %p3218_p11 = pneg %p3217_p10 }
  0x85   : > { %p3223_p2 = pnand %p3222_p9, %p3218_p11 }
  0x87   : > { %3226 = shalt.err (!%p3223_p2)
}
  0x88   : > { %2930 = dma.hbm_to_vmem [thread:$0]  (!%p3544_p13), %s805_s14, 128, %s807_s30, %s3554_s23, %s3891_s19, %s3891_s19, %s3890_s20  }
  0x89   : > { %s3898_s26 = sld [smem:[#allocation30_spill]]  ;;  %s842_s9 = scalar_lea.vmem [#allocation10], %s3542_s8 }
  0x8a   : > { %s850_s10 = sshll.u32 %s842_s9, 4  ;;  %s851_s10 = int_to_ptr.vmem [resolvable:$true] %s850_s10 }
  0x8f   : > { %s847_s27 = scalar_lea.hbm %s3898_s26, %s3538_s7  ;;  %s3249_s23 = scalar_lea.hbm %s3898_s26, 16 }
  0x90   : > { %s848_s29 = sshll.u32 %s847_s27, 4  ;;  %s849_s29 = int_to_ptr.hbm [resolvable:$true] %s848_s29 }
  0x91   : > { %s3242_s15 = sshra.s32 %s849_s29, 4  ;;  %s3243_s15 = int_to_ptr.hbm [resolvable:$true] %s3242_s15 }
  0x92   : > { %s3244_s12 = scalar_lea.hbm %s3243_s15, 8  ;;  %p3250_p10 = scmp.lt.s32.totalorder %s3243_s15, %s3898_s26 }
  0x93   : > { %p3245_p5 = scmp.ne.s32.totalorder %s3243_s15, %s3244_s12  ;;  %p3251_p11 = scmp.lt.s32.totalorder %s3249_s23, %s3244_s12 }
  0x95   : > { %p3247_p6 = pnand %p3245_p5, %p3558_p1  ;;  %p3252_p12 = por %p3251_p11, %p3250_p10 }
  0x97   : > { %p3248_p8 = pneg %p3247_p6 }
  0x99   : > { %p3253_p0 = pnand %p3252_p12, %p3248_p8 }
  0x9b   : > { %3256 = shalt.err (!%p3253_p0)
}
  0x9c   : > { %2936 = dma.hbm_to_vmem [thread:$0]  (!%p3544_p13), %s849_s29, 128, %s851_s10, %s3581_s2, %s3891_s19, %s3891_s19, %s3890_s20  }
  0x9d   : > { %884 = sbr.rel (%p3506_p7) target bundleno = 1295 (0x50f), region = 112  ;;  %s886_s21 = sand.u32 (!%p3506_p7), 1, %s3314_s28  }
  0x9e   : > { %s3671_s7 = sshll.u32 (!%p3506_p7), %s886_s21, 3  ;;  %s887_s8 = scalar_lea.sflag (!%p3506_p7), [#allocation4], %s886_s21 }
  0x9f   : > { %s890_s17 = scalar_lea.vmem (!%p3506_p7), [#allocation3], %s3671_s7 }
  0xa2   : > { %3289 = dma.done.wait (%p3497_p4), %s887_s8, 128  }
  0xa3   : > { %3291 = vsyncadd (%p3497_p4), %s887_s8, 4294967168  ;;  %s896_s19 = sand.u32 1, %s3480_s22   ;;  %s900_s1 = scalar_lea.vmem [#allocation5], %s3671_s7 }
  0xa4   : > { %s897_s20 = scalar_lea.sflag [#allocation6], %s896_s19 }
  0xa5   : > { %3293 = dma.done.wait (%p3497_p4), %s897_s20, 256  }
  0xa6   : > { %3295 = vsyncadd (%p3497_p4), %s897_s20, 4294967040  ;;  %s910_s4 = scalar_lea.vmem [#allocation7], %s3671_s7  ;;  %s917_s2 = scalar_lea.sflag [#allocation9], %s896_s19 }
  0xa7   : > { %s920_s5 = scalar_lea.vmem [#allocation8], %s3671_s7 }
  0xa8   : > { %3297 = dma.done.wait (%p3497_p4), %s917_s2, 256  }
  0xa9   : > { %3299 = vsyncadd (%p3497_p4), %s917_s2, 4294967040  ;;  %s930_s27 = scalar_lea.vmem [#allocation10], %s3671_s7 }
  0xaa   : > { %3301 = dma.done.wait (%p95_p3), [#allocation12], 4608  }
  0xab   : > { %3303 = vsyncadd (%p95_p3), [#allocation12], 4294962688 }
  0xac   : > { %3305 = dma.done.wait (%p95_p3), [#allocation15], 6144  }
  0xad   : > { %3307 = vsyncadd (%p95_p3), [#allocation15], 4294961152  ;;  %p1060_p7 = scmp.lt.s32.totalorder %s3480_s22, 1  ;;  %v2810_v1 = vld [vmem:[#allocation11 + $0x18] sm:$0xff]  ;;  %v2809_v2 = vld [vmem:[#allocation11 + $0x10] sm:$0xff]  ;;  %s3899_s29 = sld [smem:[#allocation24_spill]] }
  0xae   : > { %1151 = vmatpush.bf16.msra.mxu0 %v2810_v1  ;;  %v2554_v3 = vld [vmem:[#allocation13 + $0x70] sm:$0xf]  ;;  %v2833_v4 = vld [vmem:[#allocation13 + $0x74] sm:$0xf0]  ;;  %v2832_v5 = vld [vmem:[#allocation13 + $0x74] sm:$0xf] }
  0xaf   : > { %s3918_s22 = smov (!%p1060_p7, %s3480_s22), 1  ;;  %v2555_v6 = vor.u32 %v2833_v4, %v2554_v3  ;;  %v2556_v7 = vld [vmem:[#allocation13 + $0x78] sm:$0xf0]  ;;  %v2546_v8 = vld [vmem:[#allocation13 + $0x60] sm:$0xf]  ;;  %v2808_v14 = vld [vmem:[#allocation11 + $0x8] sm:$0xff] }
  0xb0   : > { %v2831_v9 = vld [vmem:[#allocation13 + $0x64] sm:$0xf0]  ;;  %v2559_v10 = vor.u32 %v2832_v5, %v2556_v7  ;;  %v2830_v11 = vld [vmem:[#allocation13 + $0x64] sm:$0xf]  ;;  %v2548_v12 = vld [vmem:[#allocation13 + $0x68] sm:$0xf0] }
  0xb1   : > { %1288 = vmatpush.bf16.msra.mxu1 %v2555_v6  ;;  %v2547_v13 = vor.u32 %v2831_v9, %v2546_v8  ;;  %v2551_v15 = vor.u32 %v2830_v11, %v2548_v12  ;;  %v2538_v16 = vld [vmem:[#allocation13 + $0x50] sm:$0xf]  ;;  %v2829_v17 = vld [vmem:[#allocation13 + $0x54] sm:$0xf0]  ;;  %s3704_s3 = sshll.u32 %s3918_s22, 4  ;;  %v2807_v20 = vld [vmem:[#allocation11] sm:$0xff] }
  0xb2   : > { %1152 = vmatpush.bf16.msra.mxu0 %v2809_v2  ;;  %1307 = vmatpush.bf16.msra.mxu2 %v2559_v10  ;;  %v2828_v18 = vld [vmem:[#allocation13 + $0x54] sm:$0xf]  ;;  %v2540_v19 = vld [vmem:[#allocation13 + $0x58] sm:$0xf0]  ;;  %v2539_v21 = vor.u32 %v2829_v17, %v2538_v16  ;;  %v2530_v22 = vld [vmem:[#allocation13 + $0x40] sm:$0xf] }
  0xb3   : > { %s1064_s15 = scalar_lea.vmem %s3899_s29, %s3704_s3  ;;  %v2543_v23 = vor.u32 %v2828_v18, %v2540_v19  ;;  %v2827_v24 = vld [vmem:[#allocation13 + $0x44] sm:$0xf0]  ;;  %v2826_v25 = vld [vmem:[#allocation13 + $0x44] sm:$0xf]  ;;  %v2532_v26 = vld [vmem:[#allocation13 + $0x48] sm:$0xf0] }
  0xb4   : > { %v2805_v27 = vld [vmem:[%s1064_s15] sm:$0xff]  ;;  %v2531_v28 = vor.u32 %v2827_v24, %v2530_v22  ;;  %vm1140_vm0 = vcmask 523264   ;;  %v2535_v29 = vor.u32 %v2826_v25, %v2532_v26  ;;  %v2825_v31 = vld [vmem:[#allocation13 + $0x34] sm:$0xf0]  ;;  %v2524_v33 = vld [vmem:[#allocation13 + $0x38] sm:$0xf0] }
  0xb5   : > { %1289 = vmatpush.bf16.msra.mxu1 %v2547_v13  ;;  %v2522_v30 = vld [vmem:[#allocation13 + $0x30] sm:$0xf]  ;;  %v2824_v32 = vld [vmem:[#allocation13 + $0x34] sm:$0xf]  ;;  %v2514_v37 = vld [vmem:[#allocation13 + $0x20] sm:$0xf] }
  0xb6   : > { %1153 = vmatpush.bf16.msra.mxu0 %v2808_v14  ;;  %1308 = vmatpush.bf16.msra.mxu2 %v2551_v15  ;;  %v2523_v34 = vor.u32 %v2825_v31, %v2522_v30  ;;  %v2527_v35 = vor.u32 %v2824_v32, %v2524_v33  ;;  %v2806_v36 = vld [vmem:[%s1064_s15 + $0x8] sm:$0xff]  ;;  %v2823_v38 = vld [vmem:[#allocation13 + $0x24] sm:$0xf0]  ;;  %v2822_v39 = vld [vmem:[#allocation13 + $0x24] sm:$0xf]  ;;  %s3900_s21 = sld [smem:[#allocation26_spill]] }
  0xb7   : > { %v2515_v40 = vor.u32 %v2823_v38, %v2514_v37  ;;  %v2516_v41 = vld [vmem:[#allocation13 + $0x28] sm:$0xf0]  ;;  %v2506_v43 = vld [vmem:[#allocation13 + $0x10] sm:$0xf]  ;;  %v2821_v44 = vld [vmem:[#allocation13 + $0x14] sm:$0xf0] }
  0xb8   : > { %v2519_v42 = vor.u32 %v2822_v39, %v2516_v41  ;;  %v2820_v45 = vld [vmem:[#allocation13 + $0x14] sm:$0xf]  ;;  %v2507_v46 = vor.u32 %v2821_v44, %v2506_v43  ;;  %v2508_v47 = vld [vmem:[#allocation13 + $0x18] sm:$0xf0]  ;;  %v2498_v49 = vld [vmem:[#allocation13] sm:$0xf] }
  0xb9   : > { %1290 = vmatpush.bf16.msra.mxu1 %v2539_v21  ;;  %v2511_v48 = vor.u32 %v2820_v45, %v2508_v47  ;;  %v2819_v50 = vld [vmem:[#allocation13 + $0x4] sm:$0xf0]  ;;  %v2818_v51 = vld [vmem:[#allocation13 + $0x4] sm:$0xf]  ;;  %v2500_v53 = vld [vmem:[#allocation13 + $0x8] sm:$0xf0] }
  0xba   : > { %1154 = vmatpush.bf16.msra.mxu0 %v2807_v20  ;;  %1309 = vmatpush.bf16.msra.mxu2 %v2543_v23  ;;  %v2499_v52 = vor.u32 %v2819_v50, %v2498_v49  ;;  %v2503_v54 = vor.u32 %v2818_v51, %v2500_v53  ;;  %v2989_v56 = vld [vmem:[%s3830_s11] ss:$0 sm:$0xff]  ;;  %v2841_v2 = vld [vmem:[#allocation14 + $0x38] sm:$0xff]  ;;  %v2840_v3 = vld [vmem:[#allocation14 + $0x30] sm:$0xff]  ;;  %vm1441_vm1 = vcmask 261120   ;;  %s3901_s20 = sld [smem:[#allocation37_spill]] }
  0xbb   : > { %1404 = vmatpush.bf16.msra.mxu3 %v2841_v2  ;;  %v2839_v4 = vld [vmem:[#allocation14 + $0x28] sm:$0xff]  ;;  %v2838_v5 = vld [vmem:[#allocation14 + $0x20] sm:$0xff]  ;;  %v2837_v6 = vld [vmem:[#allocation14 + $0x18] sm:$0xff]  ;;  %vm1472_vm2 = vcmask 130048   ;;  %s3902_s9 = sld [smem:[#allocation31_spill]]  ;;  %vm2119_vm3 = vcmask 1040384  }
  0xbc   : > { %v2836_v7 = vld [vmem:[#allocation14 + $0x10] sm:$0xff]  ;;  %v2835_v8 = vld [vmem:[#allocation14 + $0x8] sm:$0xff]  ;;  %v2834_v10 = vld [vmem:[#allocation14] sm:$0xff]  ;;  %s3722_s8 = scalar_lea.vmem %s3900_s21, %s3704_s3  ;;  %s3903_s12 = sld [smem:[#allocation32_spill]]  ;;  %vm2143_vm4 = vcmask 0  }
  0xbd   : > { %2494 = vmatmul.msk.bf16.vlgmr.msra.gmra.mxu0 %vm1140_vm0, %v2805_v27  ;;  %1291 = vmatpush.bf16.msra.mxu1 %v2531_v28  ;;  %v2811_v12 = vld [vmem:[%s890_s17] sm:$0xff]  ;;  %v2667_v33 = vld [vmem:[#allocation13 + $0xe0] sm:$0xf]  ;;  %s3904_s23 = sld [smem:[#allocation39_spill]] }
  0xbe   : > { %1310 = vmatpush.bf16.msra.mxu2 %v2535_v29  ;;  %v1202_v17 = vld [vmem:[%s3832_s13] sm:$0x3]  ;;  %v2857_v28 = vld [vmem:[#allocation13 + $0xf4] sm:$0xf0]  ;;  %v2856_v50 = vld [vmem:[#allocation13 + $0xf4] sm:$0xf] }
  0xbf   : > { %1405 = vmatpush.bf16.msra.mxu3 %v2840_v3  ;;  %v1205_v18 = vperm.slane %v1202_v17, 1  ;;  %v1204_v19 = vperm.slane %v1202_v17, 0  ;;  %v2675_v27 = vld [vmem:[#allocation13 + $0xf0] sm:$0xf]  ;;  %v2853_v41 = vld [vmem:[#allocation13 + $0xd4] sm:$0xf0] }
  0xc0   : > { %v2676_v32 = vor.u32 %v2857_v28, %v2675_v27  ;;  %v2677_v51 = vld [vmem:[#allocation13 + $0xf8] sm:$0xf0]  ;;  %v2651_v53 = vld [vmem:[#allocation13 + $0xc0] sm:$0xf]  ;;  %v2852_v3 = vld [vmem:[#allocation13 + $0xd4] sm:$0xf] }
  0xc1   : > { %1292 = vmatpush.bf16.msra.mxu1 %v2523_v34  ;;  %v2855_v34 = vld [vmem:[#allocation13 + $0xe4] sm:$0xf0]  ;;  %v2990_v27 = vld [vmem:[%s3901_s20] ss:$0 sm:$0xff]  ;;  %v2619_v28 = vld [vmem:[#allocation13 + $0x80] sm:$0xf]  ;;  %s1074_s10 = scalar_lea.vmem %s3902_s9, %s3704_s3 }
  0xc2   : > { %1311 = vmatpush.bf16.msra.mxu2 %v2527_v35  ;;  %v2668_v38 = vor.u32 %v2855_v34, %v2667_v33  ;;  %s1079_s16 = scalar_lea.vmem %s3903_s12, %s3704_s3  ;;  %s3905_s21 = sld [smem:[#allocation40_spill]] }
  0xc3   : > { %1406 = vmatpush.bf16.msra.mxu3 %v2839_v4  ;;  %v2661_v4 = vld [vmem:[#allocation13 + $0xd8] sm:$0xf0]  ;;  %s3906_s19 = sld [smem:[#allocation41_spill]] }
  0xc4   : > { %s3907_s2 = sld [smem:[#allocation42_spill]] }
  0xc5   : > { %1293 = vmatpush.bf16.msra.mxu1 %v2515_v40  ;;  %v2659_v40 = vld [vmem:[#allocation13 + $0xd0] sm:$0xf]  ;;  %s3909_s29 = sld [smem:[#allocation33_spill]] }
  0xc6   : > { %1312 = vmatpush.bf16.msra.mxu2 %v2519_v42  ;;  %s3910_s3 = sld [smem:[#allocation44_spill]] }
  0xc7   : > { %1407 = vmatpush.bf16.msra.mxu3 %v2838_v5  ;;  %s3911_s14 = sld [smem:[#allocation45_spill]] }
  0xc9   : > { %1294 = vmatpush.bf16.msra.mxu1 %v2507_v46 }
  0xca   : > { %1313 = vmatpush.bf16.msra.mxu2 %v2511_v48 }
  0xcb   : > { %1408 = vmatpush.bf16.msra.mxu3 %v2837_v6  ;;  %v2664_v6 = vor.u32 %v2852_v3, %v2661_v4  ;;  %s1082_s15 = scalar_lea.vmem %s3909_s29, %s3918_s22 }
  0xcc   : > { %s1085_s0 = scalar_lea.vmem %s3910_s3, %s3918_s22 }
  0xcd   : > { %2495 = vmatmul.msk.bf16.gmra.mxu0 %vm1140_vm0, %v2806_v36  ;;  %1295 = vmatpush.bf16.msra.mxu1 %v2499_v52  ;;  %v2660_v52 = vor.u32 %v2853_v41, %v2659_v40 }
  0xce   : > { %1314 = vmatpush.bf16.msra.mxu2 %v2503_v54  ;;  %v2851_v54 = vld [vmem:[#allocation13 + $0xc4] sm:$0xf0] }
  0xcf   : > { %1409 = vmatpush.bf16.msra.mxu3 %v2836_v7  ;;  %v2850_v7 = vld [vmem:[#allocation13 + $0xc4] sm:$0xf] }
  0xd2   : > { %1633 = vmatpush.bf16.msrb.mxu2 %v2676_v32  ;;  %v2621_v32 = vld [vmem:[#allocation13 + $0x88] sm:$0xf0] }
  0xd3   : > { %1410 = vmatpush.bf16.msra.mxu3 %v2835_v8  ;;  %v2653_v8 = vld [vmem:[#allocation13 + $0xc8] sm:$0xf0] }
  0xd6   : > { %1634 = vmatpush.bf16.msrb.mxu2 %v2668_v38  ;;  %v3739_v38 = vld [vmem:[%s910_s4] sm:$0xff] }
  0xd7   : > { %1411 = vmatpush.bf16.msra.mxu3 %v2834_v10  ;;  %v2848_v10 = vld [vmem:[#allocation13 + $0xb4] sm:$0xf] }
  0xda   : > { %1412 = vmatmul.bf16.vlgmr.msra.gmra.mxu3 %v2811_v12  ;;  %1635 = vmatpush.bf16.msrb.mxu2 %v2660_v52  ;;  %v2863_v52 = vld [vmem:[#allocation14 + $0x68] sm:$0xff] }
 0x13a   : > { %v1156_v55 = vpop.f32.mrf.mxu0 }
 0x13b   : > { %v1157_v58 = vadd.f32 %v2989_v56, %v1156_v55 }
 0x142   : > { %v1158_v57 = vpop.f32.mrf.mxu0 }
 0x143   : > { %v1159_v59 = vadd.f32 %v2989_v56, %v1158_v57  ;;  %v2680_v57 = vor.u32 %v2856_v50, %v2677_v51  ;;  %v2865_v50 = vld [vmem:[#allocation14 + $0x78] sm:$0xff]  ;;  %v2864_v51 = vld [vmem:[#allocation14 + $0x70] sm:$0xff] }
 0x145   : > { %v1166_v60 = vpack.c.bf16 %v1159_v59, %v1157_v58 }
 0x147   : > { %1296 = vmatmul.bf16.vlgmr.msra.gmra.mxu1 %v1166_v60  ;;  %1315 = vmatmul.bf16.vlgmr.msra.gmra.mxu2 %v1166_v60  ;;  %v2854_v60 = vld [vmem:[#allocation13 + $0xe4] sm:$0xf] }
 0x14a   : > { %v1161_v61 = vpop.f32.mrf.mxu0 }
 0x14b   : > { %v1162_v63 = vadd.f32 %v2989_v56, %v1161_v61  ;;  %v2669_v61 = vld [vmem:[#allocation13 + $0xe8] sm:$0xf0] }
 0x14c   : > { %v2672_v2 = vor.u32 %v2854_v60, %v2669_v61 }
 0x152   : > { %v1163_v62 = vpop.f32.mrf.mxu0 }
 0x153   : > { %v1164_v0 = vadd.f32 %v2989_v56, %v1163_v62  ;;  %v2652_v62 = vor.u32 %v2851_v54, %v2651_v53  ;;  %v2862_v53 = vld [vmem:[#allocation14 + $0x60] sm:$0xff]  ;;  %v2861_v54 = vld [vmem:[#allocation14 + $0x58] sm:$0xff] }
 0x155   : > { %v1167_v1 = vpack.c.bf16 %v1164_v0, %v1162_v63  ;;  %v3725_v63 = vld [vmem:[%s3722_s8] sm:$0xff]  ;;  %1636 = vmatpush.bf16.msrb.mxu2 %v2652_v62 }
 0x156   : > { %v2643_v0 = vld [vmem:[#allocation13 + $0xb0] sm:$0xf] }
 0x157   : > { %1301 = vmatmul.bf16.gmra.mxu1 %v1167_v1  ;;  %1320 = vmatmul.bf16.gmra.mxu2 %v1167_v1  ;;  %v2849_v1 = vld [vmem:[#allocation13 + $0xb4] sm:$0xf0] }
 0x158   : > { %v2644_v5 = vor.u32 %v2849_v1, %v2643_v0  ;;  %v2858_v0 = vld [vmem:[#allocation14 + $0x40] sm:$0xff] }
 0x15a   : > { %1637 = vmatpush.bf16.msrb.mxu2 %v2644_v5 }
 0x1c4   : > { %v1297_v9 = vpop.f32.mrf.mxu1 }
 0x1c5   : > { %v1298_v35 = vadd.f32 %v1297_v9, %v1204_v19  ;;  %v2656_v9 = vor.u32 %v2850_v7, %v2653_v8 }
 0x1ca   : > { %v1316_v11 = vpop.f32.mrf.mxu2 }
 0x1cb   : > { %v1317_v24 = vadd.f32 %v1316_v11, %v1205_v18  ;;  %v2645_v11 = vld [vmem:[#allocation13 + $0xb8] sm:$0xf0] }
 0x1cc   : > { %v1299_v13 = vpop.f32.mrf.mxu1  ;;  %v2648_v12 = vor.u32 %v2848_v10, %v2645_v11  ;;  %v2616_v10 = vld [vmem:[%s3832_s13 + $0x2] sm:$0x3] }
 0x1cd   : > { %v1300_v25 = vadd.f32 %v1299_v13, %v1204_v19  ;;  %v1326_v39 = vpack.c.bf16 %v1317_v24, %v1298_v35  ;;  %v3730_v13 = vld [vmem:[%s3722_s8 + $0x8] sm:$0xff]  ;;  %v1549_v11 = vperm.slane %v2616_v10, 0 }
 0x1cf   : > { %v1433_v55 = vunpack.c.l.b16 %v1326_v39  ;;  %v1499_v56 = vunpack.c.h.b16 %v1326_v39  ;;  %v3745_v39 = vld [vmem:[%s900_s1] sm:$0xff] }
 0x1d2   : > { %v1318_v14 = vpop.f32.mrf.mxu2 }
 0x1d3   : > { %v1319_v21 = vadd.f32 %v1318_v14, %v1205_v18  ;;  %v2635_v14 = vld [vmem:[#allocation13 + $0xa0] sm:$0xf] }
 0x1d4   : > { %v1302_v15 = vpop.f32.mrf.mxu1 }
 0x1d5   : > { %v1303_v23 = vadd.f32 %v1302_v15, %v1204_v19  ;;  %v1327_v36 = vpack.c.bf16 %v1319_v21, %v1300_v25  ;;  %v2847_v15 = vld [vmem:[#allocation13 + $0xa4] sm:$0xf0]  ;;  %v2627_v21 = vld [vmem:[#allocation13 + $0x90] sm:$0xf]  ;;  %v2629_v25 = vld [vmem:[#allocation13 + $0x98] sm:$0xf0] }
 0x1d6   : > { %v2636_v17 = vor.u32 %v2847_v15, %v2635_v14  ;;  %v2816_v15 = vld [vmem:[%s920_s5] sm:$0xff] }
 0x1d7   : > { %v1434_v46 = vunpack.c.l.b16 %v1327_v36  ;;  %v1500_v49 = vunpack.c.h.b16 %v1327_v36 }
 0x1d8   : > { %1638 = vmatpush.bf16.msrb.mxu2 %v2636_v17 }
 0x1d9   : > { %v1437_v58 = vpack.c.b16 %v1434_v46, %v1433_v55  ;;  %v1503_v59 = vpack.c.b16 %v1500_v49, %v1499_v56 }
 0x1da   : > { %v1321_v16 = vpop.f32.mrf.mxu2 }
 0x1db   : > { %v1322_v20 = vadd.f32 %v1321_v16, %v1205_v18  ;;  %v2846_v16 = vld [vmem:[#allocation13 + $0xa4] sm:$0xf] }
 0x1dc   : > { %v1304_v22 = vpop.f32.mrf.mxu1 }
 0x1dd   : > { %v1328_v29 = vpack.c.bf16 %v1322_v20, %v1303_v23  ;;  %v1305_v30 = vadd.f32 %v1304_v22, %v1204_v19  ;;  %v1413_v19 = vpop.f32.mrf.mxu3  ;;  %v2845_v22 = vld [vmem:[#allocation13 + $0x94] sm:$0xf0]  ;;  %v2844_v23 = vld [vmem:[#allocation13 + $0x94] sm:$0xf] }
 0x1de   : > { %v2628_v24 = vor.u32 %v2845_v22, %v2627_v21  ;;  %v1414_v34 = vadd.f32 %v2990_v27, %v1413_v19 }
 0x1df   : > { %v1435_v42 = vunpack.c.l.b16 %v1328_v29  ;;  %v1501_v44 = vunpack.c.h.b16 %v1328_v29  ;;  %v2843_v29 = vld [vmem:[#allocation13 + $0x84] sm:$0xf0] }
 0x1e0   : > { %1639 = vmatpush.bf16.msrb.mxu2 %v2628_v24 }
 0x1e2   : > { %v1323_v26 = vpop.f32.mrf.mxu2 }
 0x1e3   : > { %v1324_v31 = vadd.f32 %v1323_v26, %v1205_v18  ;;  %v2637_v18 = vld [vmem:[#allocation13 + $0xa8] sm:$0xf0]  ;;  %v2632_v26 = vor.u32 %v2844_v23, %v2629_v25 }
 0x1e4   : > { %v2640_v20 = vor.u32 %v2846_v16, %v2637_v18 }
 0x1e5   : > { %v1329_v37 = vpack.c.bf16 %v1324_v31, %v1305_v30  ;;  %v2620_v30 = vor.u32 %v2843_v29, %v2619_v28  ;;  %v2842_v31 = vld [vmem:[#allocation13 + $0x84] sm:$0xf]  ;;  %v1415_v33 = vpop.f32.mrf.mxu3 }
 0x1e6   : > { %v2624_v35 = vor.u32 %v2842_v31, %v2621_v32  ;;  %v1416_v36 = vadd.f32 %v2990_v27, %v1415_v33 }
 0x1e7   : > { %v1436_v43 = vunpack.c.l.b16 %v1329_v37  ;;  %v1502_v45 = vunpack.c.h.b16 %v1329_v37  ;;  %1640 = vmatpush.bf16.msrb.mxu2 %v2620_v30 }
 0x1e8   : > { %v1418_v37 = vpack.c.bf16 %v1416_v36, %v1414_v34 }
 0x1e9   : > { %v1438_v47 = vpack.c.b16 %v1436_v43, %v1435_v42  ;;  %v1504_v48 = vpack.c.b16 %v1502_v45, %v1501_v44 }
 0x1ea   : > { %1483 = vmatpush.bf16.msrb.mxu3 %v1418_v37 }
 0x1eb   : > { %1454 = vmatpush.bf16.msrb.mxu0 %v1438_v47  ;;  %1516 = vmatpush.bf16.msrb.mxu1 %v1504_v48 }
 0x1ed   : > { %2610 = vmatmul.msk.bf16.vlgmr.msrb.gmra.mxu3 %vm1472_vm2, %v3739_v38 }
 0x1ee   : > { %1745 = vmatpush.bf16.msra.mxu3 %v2865_v50  ;;  %v2870_v50 = vld [vmem:[#allocation16 + $0xa0] sm:$0xff] }
 0x1ef   : > { %1455 = vmatpush.bf16.msrb.mxu0 %v1437_v58  ;;  %1517 = vmatpush.bf16.msrb.mxu1 %v1503_v59  ;;  %v2859_v58 = vld [vmem:[#allocation14 + $0x48] sm:$0xff] }
 0x1f2   : > { %2604 = vmatmul.msk.bf16.vlgmr.msrb.gmra.mxu0 %vm1441_vm1, %v3725_v63  ;;  %2615 = vmatmul.msk.bf16.vlgmr.msrb.gmra.mxu1 %vm1441_vm1, %v3745_v39 }
 0x1f3   : > { %1652 = vmatpush.bf16.msra.mxu0 %v2680_v57  ;;  %1746 = vmatpush.bf16.msra.mxu3 %v2864_v51  ;;  %v2860_v57 = vld [vmem:[#allocation14 + $0x50] sm:$0xff]  ;;  %v2869_v51 = vld [vmem:[#allocation16 + $0x98] sm:$0xff] }
 0x1f7   : > { %1653 = vmatpush.bf16.msra.mxu0 %v2672_v2  ;;  %1747 = vmatpush.bf16.msra.mxu3 %v2863_v52  ;;  %v2881_v52 = vld [vmem:[#allocation16 + $0xf8] sm:$0xff] }
 0x1fb   : > { %1654 = vmatpush.bf16.msra.mxu0 %v2664_v6  ;;  %1748 = vmatpush.bf16.msra.mxu3 %v2862_v53 }
 0x1ff   : > { %1655 = vmatpush.bf16.msra.mxu0 %v2656_v9  ;;  %1749 = vmatpush.bf16.msra.mxu3 %v2861_v54  ;;  %v2880_v54 = vld [vmem:[#allocation16 + $0xf0] sm:$0xff] }
 0x202   : > { %2605 = vmatmul.msk.bf16.gmra.mxu0 %vm1441_vm1, %v3730_v13 }
 0x203   : > { %1656 = vmatpush.bf16.msra.mxu0 %v2648_v12  ;;  %1750 = vmatpush.bf16.msra.mxu3 %v2860_v57  ;;  %v1550_v12 = vperm.slane %v2616_v10, 1  ;;  %v2879_v57 = vld [vmem:[#allocation16 + $0xe8] sm:$0xff]  ;;  %v2874_v10 = vld [vmem:[#allocation16 + $0xc0] sm:$0xff] }
 0x207   : > { %1657 = vmatpush.bf16.msra.mxu0 %v2640_v20  ;;  %1751 = vmatpush.bf16.msra.mxu3 %v2859_v58 }
 0x20b   : > { %1658 = vmatpush.bf16.msra.mxu0 %v2632_v26  ;;  %1752 = vmatpush.bf16.msra.mxu3 %v2858_v0  ;;  %v2878_v0 = vld [vmem:[#allocation16 + $0xe0] sm:$0xff] }
 0x20f   : > { %1659 = vmatpush.bf16.msra.mxu0 %v2624_v35 }
 0x26f   : > { %v1457_v40 = vpop.f32.mrf.mxu0  ;;  %v1519_v56 = vpop.f32.mrf.mxu1 }
 0x270   : > { %v1490_v42 = vmax.f32 %v1457_v40, 0.0  ;;  %v1485_v55 = vpop.f32.mrf.mxu3 }
 0x271   : > { %v1520_v61 = vadd.f32 %v1519_v56, %v1485_v55  ;;  %v2868_v55 = vld [vmem:[#allocation16 + $0x90] sm:$0xff]  ;;  %v2867_v56 = vld [vmem:[#allocation16 + $0x88] sm:$0xff] }
 0x273   : > { %v1524_v1 = vmax.f32 %v1520_v61, 0.0 }
 0x277   : > { %v1459_v41 = vpop.f32.mrf.mxu0  ;;  %v1521_v60 = vpop.f32.mrf.mxu1 }
 0x278   : > { %v1491_v43 = vmax.f32 %v1459_v41, 0.0  ;;  %v1487_v59 = vpop.f32.mrf.mxu3 }
 0x279   : > { %v1522_v62 = vadd.f32 %v1521_v60, %v1487_v59  ;;  %v2866_v60 = vld [vmem:[#allocation16 + $0x80] sm:$0xff] }
 0x27a   : > { %v1526_v44 = vpack.c.bf16 %v1491_v43, %v1490_v42  ;;  %v2817_v43 = vld [vmem:[%s930_s27] sm:$0xff]  ;;  %s3908_s27 = sld [smem:[#allocation43_spill]] }
 0x27b   : > { %v1525_v2 = vmax.f32 %v1522_v62, 0.0 }
 0x27c   : > { %1641 = vmatmul.bf16.vlgmr.msrb.gmra.mxu2 %v1526_v44  ;;  %1660 = vmatmul.bf16.vlgmr.msra.gmra.mxu0 %v1526_v44 }
 0x27d   : > { %v1528_v3 = vpack.c.bf16 %v1525_v2, %v1524_v1  ;;  %v2877_v2 = vld [vmem:[#allocation16 + $0xd8] sm:$0xff] }
 0x27f   : > { %v1462_v45 = vpop.f32.mrf.mxu0  ;;  %1753 = vmatmul.bf16.vlgmr.msra.gmra.mxu3 %v1528_v3 }
 0x280   : > { %v1492_v47 = vmax.f32 %v1462_v45, 0.0  ;;  %v2991_v45 = vld [vmem:[%s3901_s20 + $0x1] ss:$0 sm:$0xff] }
 0x287   : > { %v1464_v46 = vpop.f32.mrf.mxu0 }
 0x288   : > { %v1493_v48 = vmax.f32 %v1464_v46, 0.0 }
 0x28a   : > { %v1527_v49 = vpack.c.bf16 %v1493_v48, %v1492_v47 }
 0x28c   : > { %1646 = vmatmul.bf16.gmra.mxu2 %v1527_v49  ;;  %1665 = vmatmul.bf16.gmra.mxu0 %v1527_v49 }
 0x28d   : > { %1847 = vmatpush.bf16.msrb.mxu0 %v1527_v49 }
 0x291   : > { %1848 = vmatpush.bf16.msrb.mxu0 %v1526_v44 }
 0x29c   : > { %2722 = vmatmul.msk.bf16.vlgmr.msrb.gmra.mxu0 %vm1441_vm1, %v2816_v15 }
 0x2f9   : > { %v1661_v4 = vpop.f32.mrf.mxu0 }
 0x2fa   : > { %v1662_v25 = vadd.f32 %v1661_v4, %v1550_v12  ;;  %v2876_v4 = vld [vmem:[#allocation16 + $0xd0] sm:$0xff] }
 0x2ff   : > { %v1642_v5 = vpop.f32.mrf.mxu2 }
 0x300   : > { %v1643_v19 = vadd.f32 %v1642_v5, %v1549_v11  ;;  %v2875_v5 = vld [vmem:[#allocation16 + $0xc8] sm:$0xff] }
 0x301   : > { %v1663_v6 = vpop.f32.mrf.mxu0 }
 0x302   : > { %v1664_v21 = vadd.f32 %v1663_v6, %v1550_v12  ;;  %v1671_v28 = vpack.c.bf16 %v1662_v25, %v1643_v19  ;;  %v1754_v44 = vpop.f32.mrf.mxu3 }
 0x303   : > { %v1755_v46 = vadd.f32 %v2991_v45, %v1754_v44 }
 0x304   : > { %v1764_v37 = vunpack.c.l.b16 %v1671_v28  ;;  %v1809_v40 = vunpack.c.h.b16 %v1671_v28 }
 0x307   : > { %v1644_v7 = vpop.f32.mrf.mxu2 }
 0x308   : > { %v1645_v17 = vadd.f32 %v1644_v7, %v1549_v11 }
 0x309   : > { %v1666_v8 = vpop.f32.mrf.mxu0 }
 0x30a   : > { %v1667_v18 = vadd.f32 %v1666_v8, %v1550_v12  ;;  %v1672_v26 = vpack.c.bf16 %v1664_v21, %v1645_v17  ;;  %v1756_v47 = vpop.f32.mrf.mxu3  ;;  %v1185_v17 = vld [vmem:[%s1079_s16 + $0x8] sm:$0xff] }
 0x30b   : > { %v1757_v48 = vadd.f32 %v2991_v45, %v1756_v47  ;;  %v2993_v47 = vld [vmem:[%s3905_s21 + $0x1] ss:$0 sm:$0xff]  ;;  %s1088_s21 = scalar_lea.vmem %s3911_s14, %s3918_s22 }
 0x30c   : > { %v1765_v33 = vunpack.c.l.b16 %v1672_v26  ;;  %v1810_v34 = vunpack.c.h.b16 %v1672_v26 }
 0x30d   : > { %v1759_v49 = vpack.c.bf16 %v1757_v48, %v1755_v46 }
 0x30e   : > { %v1768_v41 = vpack.c.b16 %v1765_v33, %v1764_v37  ;;  %v1813_v42 = vpack.c.b16 %v1810_v34, %v1809_v40  ;;  %v2992_v40 = vld [vmem:[%s3904_s23 + $0x1] ss:$0 sm:$0xff] }
 0x30f   : > { %v1647_v9 = vpop.f32.mrf.mxu2  ;;  %1798 = vmatpush.bf16.msra.mxu2 %v1759_v49 }
 0x310   : > { %v1648_v14 = vadd.f32 %v1647_v9, %v1549_v11 }
 0x311   : > { %v1668_v16 = vpop.f32.mrf.mxu0 }
 0x312   : > { %v1673_v22 = vpack.c.bf16 %v1667_v18, %v1648_v14  ;;  %v1669_v23 = vadd.f32 %v1668_v16, %v1550_v12  ;;  %2716 = vmatmul.msk.bf16.vlgmr.msra.gmra.mxu2 %vm1472_vm2, %v3739_v38  ;;  %v1182_v12 = vld [vmem:[%s1074_s10] sm:$0xff]  ;;  %v1183_v16 = vld [vmem:[%s1074_s10 + $0x8] sm:$0xff] }
 0x313   : > { %v1184_v14 = vld [vmem:[%s1079_s16] sm:$0xff] }
 0x314   : > { %v1766_v29 = vunpack.c.l.b16 %v1673_v22  ;;  %v1811_v30 = vunpack.c.h.b16 %v1673_v22 }
 0x317   : > { %v1649_v20 = vpop.f32.mrf.mxu2 }
 0x318   : > { %v1650_v24 = vadd.f32 %v1649_v20, %v1549_v11  ;;  %v3332_v11 = vmov 0  }
 0x319   : > { %v1850_v53 = vpop.f32.mrf.mxu0  ;;  %2987 = vset.pattern.permute.xlu0 %v3332_v11  ;;  %2988 = vset.pattern.permute.xlu1 %v3332_v11 }
 0x31a   : > { %v1674_v27 = vpack.c.bf16 %v1669_v23, %v1650_v24  ;;  %v1855_v59 = vpack.c.bf16 %v1850_v53, %v1850_v53  ;;  %1930 = vperm.xlu0 %2987, %v1182_v12   ;;  %2071 = vperm.xlu1 %2988, %v1184_v14   ;;  %v2111_v14 = vld [vmem:[%s3906_s19] sm:$0x1] }
 0x31c   : > { %v1767_v31 = vunpack.c.l.b16 %v1674_v27  ;;  %v1812_v32 = vunpack.c.h.b16 %v1674_v27  ;;  %v1883_v61 = vunpack.c.l.b16 %v1855_v59 }
 0x31e   : > { %v1769_v35 = vpack.c.b16 %v1767_v31, %v1766_v29  ;;  %v1814_v36 = vpack.c.b16 %v1812_v32, %v1811_v30 }
 0x320   : > { %1778 = vmatpush.bf16.msra.mxu1 %v1769_v35  ;;  %1823 = vmatpush.bf16.msrb.mxu3 %v1814_v36 }
 0x321   : > { %v1852_v58 = vpop.f32.mrf.mxu0 }
 0x322   : > { %v1856_v38 = vpack.c.bf16 %v1852_v58, %v1852_v58  ;;  %1935 = vperm.xlu0 %2987, %v1183_v16   ;;  %2076 = vperm.xlu1 %2988, %v1185_v17  }
 0x324   : > { %1779 = vmatpush.bf16.msra.mxu1 %v1768_v41  ;;  %1824 = vmatpush.bf16.msrb.mxu3 %v1813_v42  ;;  %v1884_v62 = vunpack.c.l.b16 %v1856_v38 }
 0x326   : > { %v1885_v1 = vpack.c.b16 %v1884_v62, %v1883_v61 }
 0x327   : > { %2714 = vmatmul.msk.bf16.vlgmr.msra.gmra.mxu1 %vm1441_vm1, %v3725_v63  ;;  %2717 = vmatmul.msk.bf16.vlgmr.msrb.gmra.mxu3 %vm1441_vm1, %v3745_v39  ;;  %v2873_v63 = vld [vmem:[#allocation16 + $0xb8] sm:$0xff]  ;;  %v2872_v39 = vld [vmem:[#allocation16 + $0xb0] sm:$0xff] }
 0x328   : > { %1872 = vmatpush.bf16.msrb.mxu1 %v1528_v3  ;;  %2039 = vmatpush.bf16.msrb.mxu2 %v2873_v63 }
 0x329   : > { %2053 = vmatpush.bf16.msra.mxu3 %v2881_v52 }
 0x32c   : > { %2040 = vmatpush.bf16.msrb.mxu2 %v2872_v39 }
 0x32d   : > { %2054 = vmatpush.bf16.msra.mxu3 %v2880_v54 }
 0x331   : > { %2055 = vmatpush.bf16.msra.mxu3 %v2879_v57 }
 0x335   : > { %2056 = vmatpush.bf16.msra.mxu3 %v2878_v0 }
 0x337   : > { %2715 = vmatmul.msk.bf16.gmra.mxu1 %vm1441_vm1, %v3730_v13  ;;  %v2871_v13 = vld [vmem:[#allocation16 + $0xa8] sm:$0xff] }
 0x338   : > { %2041 = vmatpush.bf16.msrb.mxu2 %v2871_v13 }
 0x339   : > { %2057 = vmatpush.bf16.msra.mxu3 %v2877_v2 }
 0x33c   : > { %2042 = vmatpush.bf16.msrb.mxu2 %v2870_v50 }
 0x33d   : > { %2058 = vmatpush.bf16.msra.mxu3 %v2876_v4 }
 0x340   : > { %2043 = vmatpush.bf16.msrb.mxu2 %v2869_v51 }
 0x341   : > { %2059 = vmatpush.bf16.msra.mxu3 %v2875_v5 }
 0x344   : > { %2044 = vmatpush.bf16.msrb.mxu2 %v2868_v55 }
 0x345   : > { %2060 = vmatpush.bf16.msra.mxu3 %v2874_v10 }
 0x347   : > { %2727 = vmatmul.msk.bf16.vlgmr.msrb.gmra.mxu1 %vm1472_vm2, %v2817_v43 }
 0x348   : > { %2045 = vmatpush.bf16.msrb.mxu2 %v2867_v56 }
 0x34c   : > { %2046 = vmatpush.bf16.msrb.mxu2 %v2866_v60 }
 0x34f   : > { %2047 = vmatmul.bf16.vlgmr.msrb.gmra.mxu2 %v1885_v1 }
 0x38c   : > { %v1931_v33 = vpop.permute.xlu0 %1930  ;;  %v2072_v41 = vpop.permute.xlu1 %2071 }
 0x38d   : > { %v1941_v44 = vmul.f32 %v2992_v40, %v1931_v33  ;;  %v2082_v50 = vmul.f32 %v2993_v47, %v2072_v41 }
 0x394   : > { %v1936_v46 = vpop.permute.xlu0 %1935  ;;  %v2077_v52 = vpop.permute.xlu1 %2076 }
 0x395   : > { %v1800_v30 = vpop.f32.mrf.mxu2  ;;  %v1942_v63 = vmul.f32 %v2992_v40, %v1936_v46  ;;  %v2083_v58 = vmul.f32 %v2993_v47, %v2077_v52  ;;  %v2125_v40 = vld [vmem:[%s1082_s15] sm:$0x1] }
 0x39d   : > { %v1802_v32 = vpop.f32.mrf.mxu2 }
 0x3a4   : > { %v1781_v3 = vpop.f32.mrf.mxu1 }
 0x3a5   : > { %v1805_v7 = vmax.f32 %v1781_v3, 0.0 }
 0x3aa   : > { %v1826_v31 = vpop.f32.mrf.mxu3 }
 0x3ab   : > { %v1827_v36 = vadd.f32 %v1826_v31, %v1800_v30 }
 0x3ac   : > { %v1783_v6 = vpop.f32.mrf.mxu1 }
 0x3ad   : > { %v1806_v8 = vmax.f32 %v1783_v6, 0.0  ;;  %v1831_v42 = vmax.f32 %v1827_v36, 0.0 }
 0x3af   : > { %v2095_v9 = vmax.f32 %v1805_v7, %v1806_v8 }
 0x3b2   : > { %v1828_v34 = vpop.f32.mrf.mxu3 }
 0x3b3   : > { %v1829_v37 = vadd.f32 %v1828_v34, %v1802_v32 }
 0x3b4   : > { %v1786_v15 = vpop.f32.mrf.mxu1 }
 0x3b5   : > { %v1807_v19 = vmax.f32 %v1786_v15, 0.0  ;;  %v1832_v43 = vmax.f32 %v1829_v37, 0.0  ;;  %v2113_v15 = vld [vmem:[%s3907_s2] sm:$0x1] }
 0x3b7   : > { %v2104_v48 = vmax.f32 %v1831_v42, %v1832_v43 }
 0x3b9   : > { %v2105_v53 = vrot.slane %v2104_v48, 4 }
 0x3bb   : > { %v2106_v38 = vmax.f32 %v2104_v48, %v2105_v53 }
 0x3bc   : > { %v1788_v18 = vpop.f32.mrf.mxu1 }
 0x3bd   : > { %v1808_v20 = vmax.f32 %v1788_v18, 0.0  ;;  %v2107_v1 = vrot.slane %v2106_v38, 2  ;;  %v2116_v18 = vld [vmem:[%s3908_s27] sm:$0x1] }
 0x3bf   : > { %v2096_v21 = vmax.f32 %v1807_v19, %v1808_v20  ;;  %v2108_v5 = vmax.f32 %v2106_v38, %v2107_v1 }
 0x3c1   : > { %v2097_v22 = vmax.f32 %v2095_v9, %v2096_v21  ;;  %v2109_v10 = vrot.slane %v2108_v5, 1 }
 0x3c3   : > { %v2098_v13 = vrot.slane %v2097_v22, 4  ;;  %v2110_v17 = vmax.f32 %v2108_v5, %v2109_v10 }
 0x3c4   : > { %v1874_v23 = vpop.f32.mrf.mxu1 }
 0x3c5   : > { %v1879_v24 = vpack.c.bf16 %v1874_v23, %v1874_v23  ;;  %v2099_v56 = vmax.f32 %v2097_v22, %v2098_v13  ;;  %v2117_v22 = vmul.f32 %v2116_v18, %v2110_v17 }
 0x3c7   : > { %v1889_v27 = vunpack.c.l.b16 %v1879_v24  ;;  %v2100_v61 = vrot.slane %v2099_v56, 2 }
 0x3c9   : > { %v2101_v3 = vmax.f32 %v2099_v56, %v2100_v61 }
 0x3cb   : > { %v2102_v8 = vrot.slane %v2101_v3, 1 }
 0x3cc   : > { %v1876_v25 = vpop.f32.mrf.mxu1 }
 0x3cd   : > { %v1880_v26 = vpack.c.bf16 %v1876_v25, %v1876_v25  ;;  %v2103_v12 = vmax.f32 %v2101_v3, %v2102_v8  ;;  %v2123_v25 = vld [vmem:[#allocation2] sm:$0x1] }
 0x3cf   : > { %v1890_v28 = vunpack.c.l.b16 %v1880_v26  ;;  %v2114_v20 = vmul.f32 %v2113_v15, %v2103_v12 }
 0x3d1   : > { %v1891_v29 = vpack.c.b16 %v1890_v28, %v1889_v27 }
 0x3d2   : > { %v2048_v35 = vpop.f32.mrf.mxu2 }
 0x3d3   : > { %2061 = vmatmul.bf16.vlgmr.msra.gmra.mxu3 %v1891_v29  ;;  %v2049_v49 = vadd.f32 %v2048_v35, %v1941_v44 }
 0x3da   : > { %v2050_v39 = vpop.f32.mrf.mxu2 }
 0x3db   : > { %v2051_v54 = vadd.f32 %v2050_v39, %v1942_v63 }
 0x456   : > { %v2062_v45 = vpop.f32.mrf.mxu3 }
 0x457   : > { %v2063_v51 = vadd.f32 %v2062_v45, %v2049_v49 }
 0x459   : > { %v2084_v57 = vadd.f32 %v2082_v50, %v2063_v51 }
 0x45b   : > { %v2086_v62 = vmax.f32 %v2084_v57, 0.0 }
 0x45e   : > { %v2064_v55 = vpop.f32.mrf.mxu3 }
 0x45f   : > { %v2065_v59 = vadd.f32 %v2064_v55, %v2051_v54 }
 0x461   : > { %v2085_v60 = vadd.f32 %v2083_v58, %v2065_v59 }
 0x463   : > { %v2087_v0 = vmax.f32 %v2085_v60, 0.0 }
 0x465   : > { %v2088_v2 = vmax.f32 %v2086_v62, %v2087_v0 }
 0x467   : > { %v2089_v4 = vrot.slane %v2088_v2, 4 }
 0x469   : > { %v2090_v6 = vmax.f32 %v2088_v2, %v2089_v4 }
 0x46b   : > { %v2091_v7 = vrot.slane %v2090_v6, 2 }
 0x46d   : > { %v2092_v9 = vmax.f32 %v2090_v6, %v2091_v7 }
 0x46f   : > { %v2093_v11 = vrot.slane %v2092_v9, 1 }
 0x471   : > { %v2094_v16 = vmax.f32 %v2092_v9, %v2093_v11 }
 0x473   : > { %v2112_v19 = vmul.f32 %v2111_v14, %v2094_v16 }
 0x475   : > { %v2115_v21 = vadd.f32 %v2114_v20, %v2112_v19 }
 0x477   : > { %v2118_v23 = vadd.f32 %v2117_v22, %v2115_v21 }
 0x479   : > { %v2120_v24 = vsel %vm2119_vm3, %v2118_v23, 0.0 }
 0x47a   : > { %2121 = vadd.xlane.f32.xlu2 %v2120_v24 }
 0x4ed   : > { %v2122_v26 = vpop.xlane.xlu2 %2121 }
 0x4ee   : > { %v2124_v27 = vadd.f32 %v2123_v25, %v2122_v26 }
 0x4f0   : > { %v2129_v28 = vand.u32 2147483647, %v2124_v27  ;;  %v2145_v29 = vsub.f32 0.0, %v2124_v27  ;;  %v2126_v43 = vmax.f32 %v2124_v27, 0.0  ;;  %v2127_v44 = vmul.f32 %v2125_v40, %v2124_v27 }
 0x4f2   : > { %v2130_v30 = vsub.f32 0.0, %v2129_v28  ;;  %v2146_v31 = vmul.f32 1.442695, %v2145_v29  ;;  %v2128_v39 = vsub.f32 %v2126_v43, %v2127_v44 }
 0x4f4   : > { %v2131_v32 = vmul.f32 1.442695, %v2130_v30  ;;  %2994 = vpow2.f32 %v2146_v31 }
 0x4f6   : > { %2996 = vpow2.f32 %v2131_v32 }
 0x4fa   : > { %v2995_v33 = vpop.eup %2994 }
 0x4fb   : > { %v2148_v34 = vadd.f32 1.0, %v2995_v33 }
 0x4fc   : > { %v2997_v35 = vpop.eup %2996 }
 0x4fd   : > { %v2133_v36 = vadd.f32 1.0, %v2997_v35  ;;  %2998 = vrcp.f32 %v2148_v34  ;;  %v2136_v37 = vmul.f32 -0.5, %v2997_v35  ;;  %v2139_v45 = vand.u32 2147483647, %v2997_v35 }
 0x4fe   : > { %v2160_v13 = vand.u32 2147483648, %v2148_v34  ;;  %v2158_v52 = vand.u32 2147483647, %v2148_v34  ;;  %vm2154_vm7 = vweird.f32 %v2148_v34 }
 0x4ff   : > { %3000 = vlog2.f32 %v2133_v36  ;;  %v2137_v41 = vadd.f32 1.0, %v2136_v37  ;;  %vm2140_vm5 = vcmp.lt.f32.partialorder %v2139_v45, 0.0004427343 }
 0x500   : > { %v2161_v55 = vor.u32 1.1754944e-38, %v2160_v13  ;;  %vm2159_vm9 = vcmp.eq.f32.partialorder %v2158_v52, 8.507059e+37 }
 0x501   : > { %v2138_v49 = vmul.f32 %v2997_v35, %v2137_v41 }
 0x503   : > { %v2999_v42 = vpop.eup %2998 }
 0x504   : > { %v2150_v46 = vmul.f32 %v2999_v42, %v2148_v34  ;;  %vm2155_vm6 = vweird.f32 %v2999_v42 }
 0x505   : > { %v3001_v47 = vpop.eup %3000  ;;  %vm2156_vm8 = vmor %vm2154_vm7, %vm2155_vm6 }
 0x506   : > { %v2135_v48 = vmul.f32 0.6931472, %v3001_v47  ;;  %v2151_v63 = vsub.f32 1.0, %v2150_v46 }
 0x508   : > { %v2141_v50 = vsel %vm2140_vm5, %v2138_v49, %v2135_v48  ;;  %v2152_v51 = vmul.f32 %v2999_v42, %v2151_v63 }
 0x509   : > { %v2142_v53 = vadd.f32 %v2141_v50, %v2128_v39 }
 0x50a   : > { %v2153_v54 = vadd.f32 %v2999_v42, %v2152_v51 }
 0x50b   : > { %2144 = vst.msk [vmem:[%s1085_s0] sm:$0x1] %vm2143_vm4, %v2142_v53 }
 0x50c   : > { %v2157_v56 = vsel %vm2156_vm8, %v2999_v42, %v2153_v54 }
 0x50d   : > { %v2162_v57 = vsel %vm2159_vm9, %v2161_v55, %v2157_v56 }
 0x50e   : > { %2164 = vst.msk [vmem:[%s1088_s21] sm:$0x1] %vm2143_vm4, %v2162_v57 }
 0x50f PF: > { %s3912_s2 = sld [smem:[#allocation22_spill]]  ;;  %s3914_s27 = smov %s3314_s28 }
 0x510   : > { %s3913_s8 = sld [smem:[#allocation23_spill]]  ;;  %s3915_s28 = smov %s3318_s6 }
 0x515   : > { %p45_p3 = scmp.ge.s32.totalorder %s3912_s2, 4  }
 0x516   : > { %s3916_s6 = smov %s3913_s8 }
 0x517   :  { %47 = sbr.rel (!%p45_p3) target bundleno = 32 (0x20), region = 250 }
 0x51c   :  { %2194 = vsyncpa [#allocation4], 1 }
 0x51d   :  { %2196 = vsyncpa [#allocation4 + $0x1], 1 }
 0x51e   :  { %2197 = vsyncpa [#allocation6], 1 }
 0x51f   :  { %2199 = vsyncpa [#allocation6 + $0x1], 1 }
 0x520   :  { %2200 = vsyncpa [#allocation9], 1 }
 0x521   :  { %2202 = vsyncpa [#allocation9 + $0x1], 1 }
 0x522   :  { %2203 = vsyncpa [#allocation12], 1 }
 0x523   :  { %2204 = vsyncpa [#allocation15], 1 }

</bundles_post_ra>
